<compile_context>
chip_gen: v7x
topology: tpu7x:2x2x1
jax: 0.10.0
libtpu: 0.0.40
codegen_flags: <defaults>
</compile_context>

<pallas_src>
import functools

import jax
import jax.numpy as jnp
from jax.experimental import pallas as pl
from jax.experimental.pallas import tpu as pltpu

C = 192            # channel count is hard-coded in the PyTorch module
LANES = 128        # TPU vreg lane width
_MIB = 1024 * 1024


def _detect_vmem_capacity_bytes():
    try:
        info = pltpu.get_tpu_info()
        cap = getattr(info, "vmem_capacity_bytes", None)
        if cap:
            return int(cap)
    except Exception:
        pass
    return 64 * _MIB   # conservative default (v7x-sized VMEM)


_VMEM_CAP = _detect_vmem_capacity_bytes()
_BIG_VMEM = _VMEM_CAP >= 100 * _MIB            # v5e / v6e (128 MiB VMEM)
# Streaming: mask pass per-step VMEM = 2 streams * tile_hw * 192 * 4B * 2 bufs
#   tile 16384 -> ~50 MiB (only safe on 128 MiB chips); tile 8192 -> ~25 MiB.
_TILE_CAP = 16384 if _BIG_VMEM else 8192
_STREAM_VMEM_LIMIT = (72 if _BIG_VMEM else 40) * _MIB
# Resident fast path: per-step VMEM ~= 4 * (per-sample image bytes) + consts.
_FAST_PATH_BYTES = (20 if _BIG_VMEM else 10) * _MIB
_FAST_VMEM_LIMIT = (96 if _BIG_VMEM else 52) * _MIB


def _ceil_to(x, m):
    return -(-x // m) * m


def _choose_tiling(hw, cap=_TILE_CAP):
    """Return (tile_hw, hw_pad). tile_hw is a multiple of 128; hw_pad a
    multiple of tile_hw (zero padding is sum-safe: the mean uses true hw)."""
    if hw % LANES == 0:
        for mult in range(cap // LANES, 0, -1):
            t = mult * LANES
            if hw % t == 0:
                return t, hw
    hw128 = _ceil_to(hw, LANES)
    tile = min(cap, hw128)
    return tile, _ceil_to(hw, tile)


# ---------------------------------------------------------------------------
# Shared selection math (operates on a (2C, 1) logits column).
# ---------------------------------------------------------------------------
def _gumbel_select(p, g1, g2, tau):
    p1 = p[:C]
    p2 = p[C:]
    a1 = jnp.abs(p1)
    a2 = jnp.abs(p2)
    denom = a1 + a2 + 1e-8
    l1 = a1 / denom * 5.0
    l2 = a2 / denom * 5.0
    z1 = (l1 + g1) / tau
    z2 = (l2 + g2) / tau
    m = jnp.maximum(z1, z2)
    e1 = jnp.exp(z1 - m)
    e2 = jnp.exp(z2 - m)
    sel = e1 / (e1 + e2)
    return jnp.maximum(sel * 1.1 - 0.1, 0.0)          # (C, 1)


# ---------------------------------------------------------------------------
# Path A: resident fused kernel  (avg-pool + convs + gumbel select + mask)
# ---------------------------------------------------------------------------
def _fused_resident_kernel(tau, inv_hw, img_ref, wcat_ref, bcat_ref,
                           g1_ref, g2_ref, out_ref, sel_ref):
    img = img_ref[0]                                              # (C, HW)
    s = jnp.sum(img, axis=-1, keepdims=True)                      # (C, 1)
    # Both 1x1 convs in one lane-dense MXU matmul: (2C, C) @ (C, 128); every
    # column is identical (s broadcast), take column 0.  Avoids a degenerate
    # mat-vec shape while staying trivially cheap.
    prod = jnp.dot(wcat_ref[...], jnp.broadcast_to(s, (C, LANES)),
                   preferred_element_type=jnp.float32)            # (2C, 128)
    p = prod[:, :1] * inv_hw + bcat_ref[...]                      # (2C, 1)
    sel = _gumbel_select(p, g1_ref[0], g2_ref[0], tau)            # (C, 1)
    sel_ref[...] = sel[None]
    out_ref[...] = (img * sel)[None]


# ---------------------------------------------------------------------------
# Path B pass 1: streamed global-average pool fused with the selection math
# ---------------------------------------------------------------------------
def _pool_select_kernel(tau, inv_hw, img_ref, wcat_ref, bcat_ref,
                        g1_ref, g2_ref, sel_ref, acc_ref):
    t = pl.program_id(1)

    @pl.when(t == 0)
    def _():
        acc_ref[...] = jnp.zeros_like(acc_ref)

    tile_hw = img_ref.shape[-1]
    n_chunks = tile_hw // LANES                       # tile_hw % 128 == 0
    # vreg-resident partial sum over this tile's 128-lane chunks: loads + VPU
    # adds only, a single VMEM RMW of the (C,128) scratch per grid step.
    local = img_ref[0, :, 0:LANES]
    for j in range(1, n_chunks):
        local = local + img_ref[0, :, j * LANES:(j + 1) * LANES]
    acc_ref[...] += local

    @pl.when(t == pl.num_programs(1) - 1)
    def _():
        # Fused finalize: (2C, C) @ (C, 128) MXU matmul on the raw lane sums,
        # then one cross-lane reduce, bias, and gumbel-softmax selection.
        prod = jnp.dot(wcat_ref[...], acc_ref[...],
                       preferred_element_type=jnp.float32)        # (2C, 128)
        p = jnp.sum(prod, axis=-1, keepdims=True) * inv_hw + bcat_ref[...]
        sel = _gumbel_select(p, g1_ref[0], g2_ref[0], tau)        # (C, 1)
        sel_ref[...] = sel[None]


# ---------------------------------------------------------------------------
# Path B pass 2: streamed broadcasted masking  (N, C, HW) * (N, C, 1)
# ---------------------------------------------------------------------------
def _mask_kernel(img_ref, sel_ref, out_ref):
    out_ref[...] = img_ref[...] * sel_ref[...]


# ---------------------------------------------------------------------------
# Wrapper
# ---------------------------------------------------------------------------
def dynamic_cs_forward(image_nchw, w1, b1, w2, b2, g1, g2,
                       temperature=1.0, tile_hw=None, force_streamed=False):
    """image_nchw: (N, 192, H, W) f32. Returns (selected_image, selected_amounts)."""
    N, Cc, H, W = image_nchw.shape
    assert Cc == C
    hw = H * W
    tau = float(temperature)
    inv_hw = 1.0 / float(hw)

    img = image_nchw.reshape(N, Cc, hw).astype(jnp.float32)
    # Fused conv weights/bias in "column" orientation: p[:C]=w1@avg+b1, etc.
    wcat = jnp.concatenate([w1, w2], axis=0).astype(jnp.float32)          # (2C, C)
    bcat = jnp.concatenate([b1, b2]).reshape(2 * Cc, 1).astype(jnp.float32)
    g1c = g1.astype(jnp.float32).reshape(N, Cc, 1)
    g2c = g2.astype(jnp.float32).reshape(N, Cc, 1)

    use_fast = (not force_streamed) and tile_hw is None \
        and Cc * hw * 4 <= _FAST_PATH_BYTES

    if use_fast:
        out_img, sel = pl.pallas_call(
            functools.partial(_fused_resident_kernel, tau, inv_hw),
            out_shape=(jax.ShapeDtypeStruct((N, Cc, hw), jnp.float32),
                       jax.ShapeDtypeStruct((N, Cc, 1), jnp.float32)),
            grid_spec=pltpu.PrefetchScalarGridSpec(
                num_scalar_prefetch=0,
                grid=(N,),
                in_specs=[pl.BlockSpec((1, Cc, hw), lambda n: (n, 0, 0)),
                          pl.BlockSpec((2 * Cc, Cc), lambda n: (0, 0)),
                          pl.BlockSpec((2 * Cc, 1), lambda n: (0, 0)),
                          pl.BlockSpec((1, Cc, 1), lambda n: (n, 0, 0)),
                          pl.BlockSpec((1, Cc, 1), lambda n: (n, 0, 0))],
                out_specs=[pl.BlockSpec((1, Cc, hw), lambda n: (n, 0, 0)),
                           pl.BlockSpec((1, Cc, 1), lambda n: (n, 0, 0))]),
            compiler_params=pltpu.CompilerParams(
                dimension_semantics=("parallel",),
                vmem_limit_bytes=_FAST_VMEM_LIMIT),
        )(img, wcat, bcat, g1c, g2c)
        amounts = jnp.sum(sel[:, :, 0], axis=1, keepdims=True)            # (N, 1)
        return out_img.reshape(N, Cc, H, W), amounts

    # ---- Streamed path ----
    if tile_hw is None:
        tile_hw, hw_pad = _choose_tiling(hw)
    else:
        assert tile_hw % LANES == 0, "tile_hw must be a multiple of 128"
        hw_pad = _ceil_to(hw, tile_hw)
    n_tiles = hw_pad // tile_hw
    img_s = img if hw_pad == hw else jnp.pad(img, ((0, 0), (0, 0), (0, hw_pad - hw)))

    # Pass 1: streamed pool + fused selection (sel is (N, C, 1)).
    sel = pl.pallas_call(
        functools.partial(_pool_select_kernel, tau, inv_hw),
        out_shape=jax.ShapeDtypeStruct((N, Cc, 1), jnp.float32),
        grid_spec=pltpu.PrefetchScalarGridSpec(
            num_scalar_prefetch=0,
            grid=(N, n_tiles),
            in_specs=[pl.BlockSpec((1, Cc, tile_hw), lambda n, t: (n, 0, t)),
                      pl.BlockSpec((2 * Cc, Cc), lambda n, t: (0, 0)),
                      pl.BlockSpec((2 * Cc, 1), lambda n, t: (0, 0)),
                      pl.BlockSpec((1, Cc, 1), lambda n, t: (n, 0, 0)),
                      pl.BlockSpec((1, Cc, 1), lambda n, t: (n, 0, 0))],
            out_specs=pl.BlockSpec((1, Cc, 1), lambda n, t: (n, 0, 0)),
            scratch_shapes=[pltpu.VMEM((Cc, LANES), jnp.float32)]),
        compiler_params=pltpu.CompilerParams(
            dimension_semantics=("parallel", "arbitrary"),
            vmem_limit_bytes=_STREAM_VMEM_LIMIT),
    )(img_s, wcat, bcat, g1c, g2c)

    amounts = jnp.sum(sel[:, :, 0], axis=1, keepdims=True)                # (N, 1)

    # Pass 2: streamed broadcasted masking.
    out_img = pl.pallas_call(
        _mask_kernel,
        out_shape=jax.ShapeDtypeStruct((N, Cc, hw_pad), jnp.float32),
        grid_spec=pltpu.PrefetchScalarGridSpec(
            num_scalar_prefetch=0,
            grid=(N, n_tiles),
            in_specs=[pl.BlockSpec((1, Cc, tile_hw), lambda n, t: (n, 0, t)),
                      pl.BlockSpec((1, Cc, 1), lambda n, t: (n, 0, 0))],
            out_specs=pl.BlockSpec((1, Cc, tile_hw), lambda n, t: (n, 0, t))),
        compiler_params=pltpu.CompilerParams(
            dimension_semantics=("parallel", "parallel"),
            vmem_limit_bytes=_STREAM_VMEM_LIMIT),
    )(img_s, sel)

    if hw_pad != hw:
        out_img = out_img[:, :, :hw]
    return out_img.reshape(N, Cc, H, W), amounts


def ref_forward(image, w1, b1, w2, b2, g1, g2, tau):
    """Pure-JAX reference mirroring the PyTorch forward (same gumbel noise)."""
    avg = image.mean(axis=(2, 3))                        # (N, C)
    p1 = avg @ w1.T + b1
    p2 = avg @ w2.T + b2
    a1, a2 = jnp.abs(p1), jnp.abs(p2)
    d = a1 + a2 + 1e-8
    l1, l2 = a1 / d * 5.0, a2 / d * 5.0
    z1, z2 = (l1 + g1) / tau, (l2 + g2) / tau
    m = jnp.maximum(z1, z2)
    e1, e2 = jnp.exp(z1 - m), jnp.exp(z2 - m)
    sel = e1 / (e1 + e2)
    sel = jnp.maximum(sel * 1.1 - 0.1, 0.0)
    amounts = sel.sum(axis=1, keepdims=True)
    out = image * sel[:, :, None, None]
    return out, amounts


if __name__ == "__main__":
    key = jax.random.PRNGKey(0)
    k_img, k_w1, k_b1, k_w2, k_b2, k_g1, k_g2 = jax.random.split(key, 7)

    N, H, W = 2, 16, 16
    image = jax.random.normal(k_img, (N, C, H, W), dtype=jnp.float32)

    # Deterministic parameter init (conv2d 1x1: weight (out, in), bias (out,)).
    w1 = jax.random.normal(k_w1, (C, C), dtype=jnp.float32) * 0.05
    b1 = jax.random.normal(k_b1, (C,), dtype=jnp.float32) * 0.5
    w2 = jax.random.normal(k_w2, (C, C), dtype=jnp.float32) * 0.05
    b2 = jax.random.normal(k_b2, (C,), dtype=jnp.float32) * 0.5

    # Gumbel noise sampled outside the kernel (RNG glue), one per pair slot.
    g1 = jax.random.gumbel(k_g1, (N, C), dtype=jnp.float32)
    g2 = jax.random.gumbel(k_g2, (N, C), dtype=jnp.float32)

    temperature = 1.0

    # Path A: resident fused fast path (default dispatch at this small size).
    fast_img, fast_amt = dynamic_cs_forward(
        image, w1, b1, w2, b2, g1, g2, temperature)
    # Path B: streamed path forced with tile_hw=128 so the scratch accumulator
    # + pl.when init/finalize + fused-select branch is exercised at toy size.
    str_img, str_amt = dynamic_cs_forward(
        image, w1, b1, w2, b2, g1, g2, temperature,
        tile_hw=128, force_streamed=True)
    jax.block_until_ready((fast_img, fast_amt, str_img, str_amt))

    ref_img, ref_amt = ref_forward(image, w1, b1, w2, b2, g1, g2, temperature)
    assert fast_img.shape == (N, C, H, W) and fast_amt.shape == (N, 1)
    assert str_img.shape == (N, C, H, W) and str_amt.shape == (N, 1)
    assert jnp.allclose(fast_img, ref_img, atol=1e-4, rtol=1e-4)
    assert jnp.allclose(fast_amt, ref_amt, atol=1e-3, rtol=1e-4)
    assert jnp.allclose(str_img, ref_img, atol=1e-4, rtol=1e-4)
    assert jnp.allclose(str_amt, ref_amt, atol=1e-3, rtol=1e-4)

    print("KERNEL_OK")
</pallas_src>

<mosaic_0001>
module attributes {stable_mosaic.version = 11 : i64} {
  func.func @_fused_resident_kernel(%arg0: i32, %arg1: memref<1x192x256xf32, #tpu.memory_space<vmem>>, %arg2: memref<384x192xf32, #tpu.memory_space<vmem>>, %arg3: memref<384x1xf32, #tpu.memory_space<vmem>>, %arg4: memref<1x192x1xf32, #tpu.memory_space<vmem>>, %arg5: memref<1x192x1xf32, #tpu.memory_space<vmem>>, %arg6: memref<1x192x256xf32, #tpu.memory_space<vmem>>, %arg7: memref<1x192x1xf32, #tpu.memory_space<vmem>>) attributes {dimension_semantics = [#tpu.dimension_semantics<parallel>], iteration_bounds = array<i64: 2>, scalar_prefetch = 0 : i64, scratch_operands = 0 : i64, tpu.core_type = #tpu.core_type<tc>, window_params = [{transform_indices = @transform_0, window_bounds = array<i64: 1, 192, 256>}, {pipeline_mode = #tpu.pipeline_mode<synchronous>, transform_indices = @transform_1, window_bounds = array<i64: 384, 192>}, {pipeline_mode = #tpu.pipeline_mode<synchronous>, transform_indices = @transform_2, window_bounds = array<i64: 384, 1>}, {transform_indices = @transform_3, window_bounds = array<i64: 1, 192, 1>}, {transform_indices = @transform_4, window_bounds = array<i64: 1, 192, 1>}, {transform_indices = @transform_5, window_bounds = array<i64: 1, 192, 256>}, {transform_indices = @transform_6, window_bounds = array<i64: 1, 192, 1>}]} {
    %c0 = arith.constant 0 : index
    %c0_0 = arith.constant 0 : index
    %c0_1 = arith.constant 0 : index
    %0 = vector.load %arg1[%c0, %c0_0, %c0_1] : memref<1x192x256xf32, #tpu.memory_space<vmem>>, vector<1x192x256xf32>
    %1 = vector.shape_cast %0 : vector<1x192x256xf32> to vector<192x256xf32>
    %cst = arith.constant dense<0.000000e+00> : vector<192xf32>
    %2 = vector.multi_reduction <add>, %1, %cst [1] : vector<192x256xf32> to vector<192xf32>
    %3 = vector.shape_cast %2 : vector<192xf32> to vector<192x1xf32>
    %c0_2 = arith.constant 0 : index
    %c0_3 = arith.constant 0 : index
    %4 = vector.load %arg2[%c0_2, %c0_3] : memref<384x192xf32, #tpu.memory_space<vmem>>, vector<384x192xf32>
    %5 = vector.shape_cast %3 : vector<192x1xf32> to vector<192x1xf32>
    %6 = vector.broadcast %5 : vector<192x1xf32> to vector<192x128xf32>
    %cst_4 = arith.constant dense<0.000000e+00> : vector<384x128xf32>
    %7 = tpu.matmul %4, %6, %cst_4 {dimension_numbers = #tpu.dot_dimension_numbers<[1], [0], [0], [1], [0, 0, 1, 1], [], []>} : vector<384x192xf32>, vector<192x128xf32>, vector<384x128xf32> -> vector<384x128xf32>
    %8 = vector.extract_strided_slice %7 {offsets = [0, 0], sizes = [384, 1], strides = [1, 1]} : vector<384x128xf32> to vector<384x1xf32>
    %cst_5 = arith.constant 3.906250e-03 : f32
    %9 = vector.broadcast %cst_5 : f32 to vector<384x1xf32>
    %10 = arith.mulf %8, %9 : vector<384x1xf32>
    %c0_6 = arith.constant 0 : index
    %c0_7 = arith.constant 0 : index
    %11 = vector.load %arg3[%c0_6, %c0_7] : memref<384x1xf32, #tpu.memory_space<vmem>>, vector<384x1xf32>
    %12 = arith.addf %10, %11 : vector<384x1xf32>
    %c0_8 = arith.constant 0 : index
    %c0_9 = arith.constant 0 : index
    %c0_10 = arith.constant 0 : index
    %13 = vector.load %arg4[%c0_8, %c0_9, %c0_10] : memref<1x192x1xf32, #tpu.memory_space<vmem>>, vector<1x192x1xf32>
    %14 = vector.shape_cast %13 : vector<1x192x1xf32> to vector<192x1xf32>
    %c0_11 = arith.constant 0 : index
    %c0_12 = arith.constant 0 : index
    %c0_13 = arith.constant 0 : index
    %15 = vector.load %arg5[%c0_11, %c0_12, %c0_13] : memref<1x192x1xf32, #tpu.memory_space<vmem>>, vector<1x192x1xf32>
    %16 = vector.shape_cast %15 : vector<1x192x1xf32> to vector<192x1xf32>
    %17 = vector.extract_strided_slice %12 {offsets = [0, 0], sizes = [192, 1], strides = [1, 1]} : vector<384x1xf32> to vector<192x1xf32>
    %18 = vector.extract_strided_slice %12 {offsets = [192, 0], sizes = [192, 1], strides = [1, 1]} : vector<384x1xf32> to vector<192x1xf32>
    %19 = math.absf %17 : vector<192x1xf32>
    %20 = math.absf %18 : vector<192x1xf32>
    %21 = arith.addf %19, %20 : vector<192x1xf32>
    %cst_14 = arith.constant 9.99999993E-9 : f32
    %22 = vector.broadcast %cst_14 : f32 to vector<192x1xf32>
    %23 = arith.addf %21, %22 : vector<192x1xf32>
    %24 = arith.divf %19, %23 : vector<192x1xf32>
    %cst_15 = arith.constant 5.000000e+00 : f32
    %25 = vector.broadcast %cst_15 : f32 to vector<192x1xf32>
    %26 = arith.mulf %24, %25 : vector<192x1xf32>
    %27 = arith.divf %20, %23 : vector<192x1xf32>
    %cst_16 = arith.constant 5.000000e+00 : f32
    %28 = vector.broadcast %cst_16 : f32 to vector<192x1xf32>
    %29 = arith.mulf %27, %28 : vector<192x1xf32>
    %30 = arith.addf %26, %14 : vector<192x1xf32>
    %cst_17 = arith.constant 1.000000e+00 : f32
    %31 = vector.broadcast %cst_17 : f32 to vector<192x1xf32>
    %32 = arith.divf %30, %31 : vector<192x1xf32>
    %33 = arith.addf %29, %16 : vector<192x1xf32>
    %cst_18 = arith.constant 1.000000e+00 : f32
    %34 = vector.broadcast %cst_18 : f32 to vector<192x1xf32>
    %35 = arith.divf %33, %34 : vector<192x1xf32>
    %36 = arith.maximumf %32, %35 : vector<192x1xf32>
    %37 = arith.subf %32, %36 : vector<192x1xf32>
    %38 = math.exp %37 : vector<192x1xf32>
    %39 = arith.subf %35, %36 : vector<192x1xf32>
    %40 = math.exp %39 : vector<192x1xf32>
    %41 = arith.addf %38, %40 : vector<192x1xf32>
    %42 = arith.divf %38, %41 : vector<192x1xf32>
    %cst_19 = arith.constant 1.100000e+00 : f32
    %43 = vector.broadcast %cst_19 : f32 to vector<192x1xf32>
    %44 = arith.mulf %42, %43 : vector<192x1xf32>
    %cst_20 = arith.constant 1.000000e-01 : f32
    %45 = vector.broadcast %cst_20 : f32 to vector<192x1xf32>
    %46 = arith.subf %44, %45 : vector<192x1xf32>
    %cst_21 = arith.constant 0.000000e+00 : f32
    %47 = vector.broadcast %cst_21 : f32 to vector<192x1xf32>
    %48 = arith.maximumf %46, %47 : vector<192x1xf32>
    %49 = vector.shape_cast %48 : vector<192x1xf32> to vector<1x192x1xf32>
    %c0_22 = arith.constant 0 : index
    %c0_23 = arith.constant 0 : index
    %c0_24 = arith.constant 0 : index
    %50 = vector.load %arg7[%c0_22, %c0_23, %c0_24] : memref<1x192x1xf32, #tpu.memory_space<vmem>>, vector<1x192x1xf32>
    tpu.vector_store %arg7[%c0_22, %c0_23, %c0_24], %49 {strides = array<i32>} : memref<1x192x1xf32, #tpu.memory_space<vmem>>, vector<1x192x1xf32>,
    %51 = vector.broadcast %48 : vector<192x1xf32> to vector<192x256xf32>
    %52 = arith.mulf %1, %51 : vector<192x256xf32>
    %53 = vector.shape_cast %52 : vector<192x256xf32> to vector<1x192x256xf32>
    %c0_25 = arith.constant 0 : index
    %c0_26 = arith.constant 0 : index
    %c0_27 = arith.constant 0 : index
    %54 = vector.load %arg6[%c0_25, %c0_26, %c0_27] : memref<1x192x256xf32, #tpu.memory_space<vmem>>, vector<1x192x256xf32>
    tpu.vector_store %arg6[%c0_25, %c0_26, %c0_27], %53 {strides = array<i32>} : memref<1x192x256xf32, #tpu.memory_space<vmem>>, vector<1x192x256xf32>,
    return
  }
  func.func @transform_0(%arg0: i32) -> (i32, i32, i32) {
    %c0_i32 = arith.constant 0 : i32
    %c0_i32_0 = arith.constant 0 : i32
    %c0_i32_1 = arith.constant 0 : i32
    return %arg0, %c0_i32, %c0_i32_0 : i32, i32, i32
  }
  func.func @transform_1(%arg0: i32) -> (i32, i32) {
    %c0_i32 = arith.constant 0 : i32
    %c0_i32_0 = arith.constant 0 : i32
    %c0_i32_1 = arith.constant 0 : i32
    return %c0_i32, %c0_i32_0 : i32, i32
  }
  func.func @transform_2(%arg0: i32) -> (i32, i32) {
    %c0_i32 = arith.constant 0 : i32
    %c0_i32_0 = arith.constant 0 : i32
    %c0_i32_1 = arith.constant 0 : i32
    return %c0_i32, %c0_i32_0 : i32, i32
  }
  func.func @transform_3(%arg0: i32) -> (i32, i32, i32) {
    %c0_i32 = arith.constant 0 : i32
    %c0_i32_0 = arith.constant 0 : i32
    %c0_i32_1 = arith.constant 0 : i32
    return %arg0, %c0_i32, %c0_i32_0 : i32, i32, i32
  }
  func.func @transform_4(%arg0: i32) -> (i32, i32, i32) {
    %c0_i32 = arith.constant 0 : i32
    %c0_i32_0 = arith.constant 0 : i32
    %c0_i32_1 = arith.constant 0 : i32
    return %arg0, %c0_i32, %c0_i32_0 : i32, i32, i32
  }
  func.func @transform_5(%arg0: i32) -> (i32, i32, i32) {
    %c0_i32 = arith.constant 0 : i32
    %c0_i32_0 = arith.constant 0 : i32
    %c0_i32_1 = arith.constant 0 : i32
    return %arg0, %c0_i32, %c0_i32_0 : i32, i32, i32
  }
  func.func @transform_6(%arg0: i32) -> (i32, i32, i32) {
    %c0_i32 = arith.constant 0 : i32
    %c0_i32_0 = arith.constant 0 : i32
    %c0_i32_1 = arith.constant 0 : i32
    return %arg0, %c0_i32, %c0_i32_0 : i32, i32, i32
  }
}

</mosaic_0001>

<bundles_post_ra>
// kernel: tpu_custom_call.1
= control target key start
LH: loop header
LB: loop body
LE: loop exit
PB: predicated region body
PF: predicated region fallthrough
CT: control target
= control target key end

     0   :  { %12 = vsyncpa [#allocation3], 0  ;;  %s4098_s0 = inlined_call_operand.vmem [shape: f32[2,192,256], index: 0, kind: input, shape index: {}]   ;;  %s4099_s1 = inlined_call_operand.vmem [shape: f32[384,192], index: 1, kind: input, shape index: {}]   ;;  %s4100_s2 = inlined_call_operand.vmem [shape: f32[384,1], index: 2, kind: input, shape index: {}]   ;;  %s4101_s3 = inlined_call_operand.vmem [shape: f32[2,192,1], index: 3, kind: input, shape index: {}]   ;;  %s4102_s4 = inlined_call_operand.vmem [shape: f32[2,192,1], index: 4, kind: input, shape index: {}]   ;;  %s4103_s5 = inlined_call_operand.hbm [shape: f32[2,192,256], index: 5, kind: output, shape index: {0}]   ;;  %s4104_s6 = inlined_call_operand.vmem [shape: f32[2,192,1], index: 6, kind: output, shape index: {1}]  }
   0x1   :  { %14 = vsyncpa [#allocation3 + $0x1], 0  ;;  %s2647_s21 = smov 0   ;;  %s2649_s22 = smov 0  }
   0x2   :  { %s2651_s23 = smov 0   ;;  %s2653_s24 = smov 0  }
   0x3 LB: > { %s2668_s25 = sadd.s32 4294967295, %s2605_s24   ;;  %s2111_s26 = sadd.s32 4294967294, %s2605_s24   ;;  %s2605_s24 = sphi %s2653_s24, %s4132_s24   ;;  %s2601_s23 = sphi %s2651_s23, %s4131_s23   ;;  %s2597_s22 = sphi %s2649_s22, %s4130_s22   ;;  %s2593_s21 = sphi %s2647_s21, %s4129_s21  }
   0x4   : > { %s2672_s27 = sadd.s32 1, %s2605_s24   ;;  %s147_s28 = sadd.s32 1, %s2601_s23 }
   0x5   : > { %s144_s29 = ssub.s32 %s2605_s24, %s2672_s27  ;;  %p157_p0 = scmp.ne.s32.totalorder %s2601_s23, %s2597_s22 }
   0x6   : > { %p145_p1 = scmp.eq.s32.totalorder %s144_s29, 0  ;;  %p158_p2 = scmp.eq.s32.totalorder %s2668_s25, 1 }
   0x7   : > { %p163_p3 = scmp.ne.s32.totalorder %s2597_s22, %s2593_s21  ;;  %p164_p4 = scmp.eq.s32.totalorder %s2111_s26, 1 }
   0x8   : > { %s2683_s30 = scalar_select %p145_p1, %s2601_s23, %s147_s28  }
   0x9   : > { %p2685_p5 = por %p158_p2, %p157_p0  ;;  %p2689_p6 = por %p164_p4, %p163_p3 }
   0xa   : > { %p2114_p7 = scmp.ge.s32.totalorder %s2605_s24, 1  ;;  %p238_p8 = scmp.lt.s32.totalorder %s2605_s24, 3 }
   0xc   : > { %p239_p9 = pnand %p2114_p7, %p238_p8 }
   0xe   : > { %242 = sbr.rel (%p239_p9) target bundleno = 791 (0x317), region = 40 }
  0x15   : > { %p283_p10 = scmp.lt.s32.totalorder %s2668_s25, 1  ;;  %v2607_v41 = vmov 0.0|0.0   ;;  %vm519_vm0 = vcmask 523264   ;;  %vm1737_vm1 = vcmask 7168  }
  0x16   : > { %2194 = vmatprep.subr.bf16.mxu0 %v2607_v41  ;;  %2230 = vmatprep.subr.bf16.mxu1 %v2607_v41 }
  0x17   : > { %s2697_s9 = scalar_select %p283_p10, %s2668_s25, 1 }
  0x19   : > { %s2255_s10 = smul.u32 384, %s2697_s9 }
  0x1a   : > { %s3168_s14 = smul.u32 192, %s2697_s9  ;;  %s2609_s9 = smov [#allocation2]  }
  0x1b   : > { %s2703_s13 = scalar_lea.vmem %s4098_s0, %s2255_s10  ;;  %s2547_s19 = sshll.u32 %s2609_s9, 4  ;;  %s2548_s19 = int_to_ptr.vmem [resolvable:$false] %s2547_s19 }
  0x1c   : > { %v307_v0 = vld [vmem:[%s2703_s13 + $0x20] sm:$0xff]  ;;  %v308_v1 = vld [vmem:[%s2703_s13 + $0x28] sm:$0xff]  ;;  %v309_v5 = vld [vmem:[%s2703_s13 + $0x30] sm:$0xff]  ;;  %s3194_s20 = scalar_lea.vmem %s4101_s3, %s3168_s14  ;;  %s3200_s29 = scalar_lea.vmem %s4102_s4, %s3168_s14 }
  0x1d   : > { %v303_v2 = vld [vmem:[%s2703_s13] sm:$0xff]  ;;  %v357_v3 = vadd.f32 %v308_v1, %v307_v0  ;;  %v304_v4 = vld [vmem:[%s2703_s13 + $0x8] sm:$0xff]  ;;  %v310_v6 = vld [vmem:[%s2703_s13 + $0x38] sm:$0xff]  ;;  %s3709_s10 = scalar_lea.vmem %s4104_s6, %s3168_s14 }
  0x1e   : > { %v351_v7 = vadd.f32 %v304_v4, %v303_v2  ;;  %v305_v8 = vld [vmem:[%s2703_s13 + $0x10] sm:$0xff]  ;;  %v306_v9 = vld [vmem:[%s2703_s13 + $0x18] sm:$0xff]  ;;  %v360_v10 = vadd.f32 %v310_v6, %v309_v5  ;;  %v311_v14 = vld [vmem:[%s2703_s13 + $0x40] sm:$0xff] }
  0x1f   : > { %358 = vadd.xlane.f32.xlu1 %v357_v3  ;;  %v354_v11 = vadd.f32 %v306_v9, %v305_v8  ;;  %v313_v12 = vld [vmem:[%s2703_s13 + $0x50] sm:$0xff]  ;;  %v314_v13 = vld [vmem:[%s2703_s13 + $0x58] sm:$0xff]  ;;  %v312_v15 = vld [vmem:[%s2703_s13 + $0x48] sm:$0xff] }
  0x20   : > { %352 = vadd.xlane.f32.xlu0 %v351_v7  ;;  %v366_v16 = vadd.f32 %v314_v13, %v313_v12  ;;  %v363_v17 = vadd.f32 %v312_v15, %v311_v14  ;;  %v317_v18 = vld [vmem:[%s2703_s13 + $0x70] sm:$0xff]  ;;  %v318_v19 = vld [vmem:[%s2703_s13 + $0x78] sm:$0xff]  ;;  %v315_v20 = vld [vmem:[%s2703_s13 + $0x60] sm:$0xff] }
  0x21   : > { %v316_v21 = vld [vmem:[%s2703_s13 + $0x68] sm:$0xff]  ;;  %v372_v22 = vadd.f32 %v318_v19, %v317_v18  ;;  %v321_v24 = vld [vmem:[%s2703_s13 + $0x90] sm:$0xff]  ;;  %v322_v25 = vld [vmem:[%s2703_s13 + $0x98] sm:$0xff] }
  0x22   : > { %v369_v23 = vadd.f32 %v316_v21, %v315_v20  ;;  %v319_v26 = vld [vmem:[%s2703_s13 + $0x80] sm:$0xff]  ;;  %v320_v27 = vld [vmem:[%s2703_s13 + $0x88] sm:$0xff]  ;;  %v378_v28 = vadd.f32 %v322_v25, %v321_v24  ;;  %v325_v30 = vld [vmem:[%s2703_s13 + $0xb0] sm:$0xff] }
  0x23   : > { %361 = vadd.xlane.f32.xlu1 %v360_v10  ;;  %v375_v29 = vadd.f32 %v320_v27, %v319_v26  ;;  %v326_v31 = vld [vmem:[%s2703_s13 + $0xb8] sm:$0xff]  ;;  %v323_v32 = vld [vmem:[%s2703_s13 + $0xa0] sm:$0xff]  ;;  %v324_v33 = vld [vmem:[%s2703_s13 + $0xa8] sm:$0xff] }
  0x24   : > { %355 = vadd.xlane.f32.xlu0 %v354_v11  ;;  %v384_v34 = vadd.f32 %v326_v31, %v325_v30  ;;  %v381_v35 = vadd.f32 %v324_v33, %v323_v32  ;;  %v329_v36 = vld [vmem:[%s2703_s13 + $0xd0] sm:$0xff]  ;;  %v330_v37 = vld [vmem:[%s2703_s13 + $0xd8] sm:$0xff]  ;;  %v327_v38 = vld [vmem:[%s2703_s13 + $0xc0] sm:$0xff] }
  0x25   : > { %v328_v39 = vld [vmem:[%s2703_s13 + $0xc8] sm:$0xff]  ;;  %v390_v40 = vadd.f32 %v330_v37, %v329_v36  ;;  %v333_v43 = vld [vmem:[%s2703_s13 + $0xf0] sm:$0xff]  ;;  %v334_v44 = vld [vmem:[%s2703_s13 + $0xf8] sm:$0xff] }
  0x26   : > { %v387_v42 = vadd.f32 %v328_v39, %v327_v38  ;;  %v331_v45 = vld [vmem:[%s2703_s13 + $0xe0] sm:$0xff]  ;;  %v332_v46 = vld [vmem:[%s2703_s13 + $0xe8] sm:$0xff]  ;;  %v396_v47 = vadd.f32 %v334_v44, %v333_v43  ;;  %v337_v49 = vld [vmem:[%s2703_s13 + $0x110] sm:$0xff] }
  0x27   : > { %367 = vadd.xlane.f32.xlu1 %v366_v16  ;;  %v393_v48 = vadd.f32 %v332_v46, %v331_v45  ;;  %v338_v50 = vld [vmem:[%s2703_s13 + $0x118] sm:$0xff]  ;;  %v335_v51 = vld [vmem:[%s2703_s13 + $0x100] sm:$0xff]  ;;  %v336_v52 = vld [vmem:[%s2703_s13 + $0x108] sm:$0xff] }
  0x28   : > { %364 = vadd.xlane.f32.xlu0 %v363_v17  ;;  %v402_v53 = vadd.f32 %v338_v50, %v337_v49  ;;  %v399_v54 = vadd.f32 %v336_v52, %v335_v51  ;;  %v341_v55 = vld [vmem:[%s2703_s13 + $0x130] sm:$0xff]  ;;  %v342_v56 = vld [vmem:[%s2703_s13 + $0x138] sm:$0xff]  ;;  %v339_v57 = vld [vmem:[%s2703_s13 + $0x120] sm:$0xff] }
  0x29   : > { %v340_v58 = vld [vmem:[%s2703_s13 + $0x128] sm:$0xff]  ;;  %v408_v59 = vadd.f32 %v342_v56, %v341_v55  ;;  %v345_v61 = vld [vmem:[%s2703_s13 + $0x150] sm:$0xff]  ;;  %v346_v62 = vld [vmem:[%s2703_s13 + $0x158] sm:$0xff] }
  0x2a   : > { %v405_v60 = vadd.f32 %v340_v58, %v339_v57  ;;  %v343_v63 = vld [vmem:[%s2703_s13 + $0x140] sm:$0xff]  ;;  %v344_v0 = vld [vmem:[%s2703_s13 + $0x148] sm:$0xff]  ;;  %v414_v1 = vadd.f32 %v346_v62, %v345_v61  ;;  %v349_v3 = vld [vmem:[%s2703_s13 + $0x170] sm:$0xff] }
  0x2b   : > { %373 = vadd.xlane.f32.xlu1 %v372_v22  ;;  %v411_v2 = vadd.f32 %v344_v0, %v343_v63  ;;  %v350_v4 = vld [vmem:[%s2703_s13 + $0x178] sm:$0xff]  ;;  %v347_v5 = vld [vmem:[%s2703_s13 + $0x160] sm:$0xff]  ;;  %v348_v6 = vld [vmem:[%s2703_s13 + $0x168] sm:$0xff] }
  0x2c   : > { %370 = vadd.xlane.f32.xlu0 %v369_v23  ;;  %v420_v7 = vadd.f32 %v350_v4, %v349_v3  ;;  %v417_v8 = vadd.f32 %v348_v6, %v347_v5  ;;  %v424_v9 = vld [vmem:[%s4099_s1 + $0x8] sm:$0xff]  ;;  %v471_v49 = vld [vmem:[%s4099_s1 + $0x180] sm:$0xff]  ;;  %v426_v50 = vld [vmem:[%s4099_s1 + $0x18] sm:$0xff] }
  0x2d   : > { %v472_v10 = vld [vmem:[%s4099_s1 + $0x188] sm:$0xff]  ;;  %2119 = vmatprep.mubr.msk.f32.mxu0 %vm519_vm0, %v424_v9  ;;  %v474_v51 = vld [vmem:[%s4099_s1 + $0x198] sm:$0xff]  ;;  %v473_v52 = vld [vmem:[%s4099_s1 + $0x190] sm:$0xff] }
  0x2e   : > { %2143 = vmatprep.mubr.msk.f32.mxu1 %vm519_vm0, %v472_v10  ;;  %v427_v55 = vld [vmem:[%s4099_s1 + $0x20] sm:$0xff]  ;;  %v430_v57 = vld [vmem:[%s4099_s1 + $0x38] sm:$0xff]  ;;  %v432_v61 = vld [vmem:[%s4099_s1 + $0x48] sm:$0xff] }
  0x2f   : > { %379 = vadd.xlane.f32.xlu1 %v378_v28  ;;  %v475_v56 = vld [vmem:[%s4099_s1 + $0x1a0] sm:$0xff]  ;;  %v478_v58 = vld [vmem:[%s4099_s1 + $0x1b8] sm:$0xff]  ;;  %v480_v62 = vld [vmem:[%s4099_s1 + $0x1c8] sm:$0xff] }
  0x30   : > { %376 = vadd.xlane.f32.xlu0 %v375_v29  ;;  %v431_v63 = vld [vmem:[%s4099_s1 + $0x40] sm:$0xff]  ;;  %v433_v3 = vld [vmem:[%s4099_s1 + $0x50] sm:$0xff]  ;;  %v436_v5 = vld [vmem:[%s4099_s1 + $0x68] sm:$0xff] }
  0x31   : > { %v479_v0 = vld [vmem:[%s4099_s1 + $0x1c0] sm:$0xff]  ;;  %v481_v4 = vld [vmem:[%s4099_s1 + $0x1d0] sm:$0xff]  ;;  %v484_v6 = vld [vmem:[%s4099_s1 + $0x1e8] sm:$0xff] }
  0x32   : > { %v438_v9 = vld [vmem:[%s4099_s1 + $0x78] sm:$0xff] }
  0x33   : > { %385 = vadd.xlane.f32.xlu1 %v384_v34  ;;  %v486_v10 = vld [vmem:[%s4099_s1 + $0x1f8] sm:$0xff] }
  0x34   : > { %382 = vadd.xlane.f32.xlu0 %v381_v35 }
  0x37   : > { %391 = vadd.xlane.f32.xlu1 %v390_v40 }
  0x38   : > { %388 = vadd.xlane.f32.xlu0 %v387_v42 }
  0x3b   : > { %397 = vadd.xlane.f32.xlu1 %v396_v47 }
  0x3c   : > { %394 = vadd.xlane.f32.xlu0 %v393_v48  ;;  %v423_v48 = vld [vmem:[%s4099_s1] sm:$0xff] }
  0x3f   : > { %403 = vadd.xlane.f32.xlu1 %v402_v53  ;;  %v428_v53 = vld [vmem:[%s4099_s1 + $0x28] sm:$0xff] }
  0x40   : > { %400 = vadd.xlane.f32.xlu0 %v399_v54  ;;  %v476_v54 = vld [vmem:[%s4099_s1 + $0x1a8] sm:$0xff] }
  0x43   : > { %409 = vadd.xlane.f32.xlu1 %v408_v59  ;;  %v429_v59 = vld [vmem:[%s4099_s1 + $0x30] sm:$0xff] }
  0x44   : > { %406 = vadd.xlane.f32.xlu0 %v405_v60  ;;  %v477_v60 = vld [vmem:[%s4099_s1 + $0x1b0] sm:$0xff] }
  0x47   : > { %415 = vadd.xlane.f32.xlu1 %v414_v1  ;;  %v434_v1 = vld [vmem:[%s4099_s1 + $0x58] sm:$0xff] }
  0x48   : > { %412 = vadd.xlane.f32.xlu0 %v411_v2  ;;  %v482_v2 = vld [vmem:[%s4099_s1 + $0x1d8] sm:$0xff] }
  0x4b   : > { %421 = vadd.xlane.f32.xlu1 %v420_v7  ;;  %v435_v7 = vld [vmem:[%s4099_s1 + $0x60] sm:$0xff] }
  0x4c   : > { %418 = vadd.xlane.f32.xlu0 %v417_v8  ;;  %v483_v8 = vld [vmem:[%s4099_s1 + $0x1e0] sm:$0xff] }
  0xac   : > { %v359_v11 = vpop.xlane.xlu1 %358 }
  0xad   : > { %v353_v12 = vpop.xlane.xlu0 %352 }
  0xb0   : > { %v362_v13 = vpop.xlane.xlu1 %361 }
  0xb1   : > { %v356_v14 = vpop.xlane.xlu0 %355  ;;  %v2198_v18 = vpack.c.bf16 %v362_v13, %v359_v11  ;;  %v437_v11 = vld [vmem:[%s4099_s1 + $0x70] sm:$0xff]  ;;  %v440_v13 = vld [vmem:[%s4099_s1 + $0x88] sm:$0xff] }
  0xb2   : > { %v2195_v15 = vpack.c.bf16 %v356_v14, %v353_v12  ;;  %v485_v12 = vld [vmem:[%s4099_s1 + $0x1f0] sm:$0xff]  ;;  %v488_v14 = vld [vmem:[%s4099_s1 + $0x208] sm:$0xff] }
  0xb4   : > { %2196 = vmatpush1.bf16.msra.mxu0 %v2195_v15  ;;  %2242 = vmatpush1.bf16.msra.mxu1 %v2195_v15  ;;  %v368_v16 = vpop.xlane.xlu1 %367  ;;  %v439_v15 = vld [vmem:[%s4099_s1 + $0x80] sm:$0xff] }
  0xb5   : > { %2197 = vmatprep.subr.bf16.mxu0 %v2607_v41  ;;  %2231 = vmatprep.subr.bf16.mxu1 %v2607_v41  ;;  %v365_v17 = vpop.xlane.xlu0 %364 }
  0xb6   : > { %v2201_v19 = vpack.c.bf16 %v368_v16, %v365_v17  ;;  %v487_v16 = vld [vmem:[%s4099_s1 + $0x200] sm:$0xff]  ;;  %v442_v17 = vld [vmem:[%s4099_s1 + $0x98] sm:$0xff] }
  0xb8   : > { %2199 = vmatpush1.bf16.msra.mxu0 %v2198_v18  ;;  %2243 = vmatpush1.bf16.msra.mxu1 %v2198_v18  ;;  %v374_v20 = vpop.xlane.xlu1 %373  ;;  %v490_v18 = vld [vmem:[%s4099_s1 + $0x218] sm:$0xff] }
  0xb9   : > { %2200 = vmatprep.subr.bf16.mxu0 %v2607_v41  ;;  %2232 = vmatprep.subr.bf16.mxu1 %v2607_v41  ;;  %v371_v21 = vpop.xlane.xlu0 %370 }
  0xba   : > { %v2204_v22 = vpack.c.bf16 %v374_v20, %v371_v21  ;;  %v489_v20 = vld [vmem:[%s4099_s1 + $0x210] sm:$0xff]  ;;  %v444_v21 = vld [vmem:[%s4099_s1 + $0xa8] sm:$0xff] }
  0xbc   : > { %2202 = vmatpush1.bf16.msra.mxu0 %v2201_v19  ;;  %2244 = vmatpush1.bf16.msra.mxu1 %v2201_v19  ;;  %v380_v23 = vpop.xlane.xlu1 %379  ;;  %v441_v19 = vld [vmem:[%s4099_s1 + $0x90] sm:$0xff] }
  0xbd   : > { %2203 = vmatprep.subr.bf16.mxu0 %v2607_v41  ;;  %2233 = vmatprep.subr.bf16.mxu1 %v2607_v41  ;;  %v377_v24 = vpop.xlane.xlu0 %376 }
  0xbe   : > { %v2207_v25 = vpack.c.bf16 %v380_v23, %v377_v24  ;;  %v443_v23 = vld [vmem:[%s4099_s1 + $0xa0] sm:$0xff] }
  0xbf   : > { %v491_v24 = vld [vmem:[%s4099_s1 + $0x220] sm:$0xff] }
  0xc0   : > { %2205 = vmatpush1.bf16.msra.mxu0 %v2204_v22  ;;  %2245 = vmatpush1.bf16.msra.mxu1 %v2204_v22  ;;  %v386_v26 = vpop.xlane.xlu1 %385  ;;  %v492_v22 = vld [vmem:[%s4099_s1 + $0x228] sm:$0xff] }
  0xc1   : > { %2206 = vmatprep.subr.bf16.mxu0 %v2607_v41  ;;  %2234 = vmatprep.subr.bf16.mxu1 %v2607_v41  ;;  %v383_v27 = vpop.xlane.xlu0 %382 }
  0xc2   : > { %v2210_v28 = vpack.c.bf16 %v386_v26, %v383_v27  ;;  %v494_v26 = vld [vmem:[%s4099_s1 + $0x238] sm:$0xff]  ;;  %v445_v27 = vld [vmem:[%s4099_s1 + $0xb0] sm:$0xff] }
  0xc4   : > { %2208 = vmatpush1.bf16.msra.mxu0 %v2207_v25  ;;  %2246 = vmatpush1.bf16.msra.mxu1 %v2207_v25  ;;  %v392_v29 = vpop.xlane.xlu1 %391  ;;  %v446_v25 = vld [vmem:[%s4099_s1 + $0xb8] sm:$0xff] }
  0xc5   : > { %2209 = vmatprep.subr.bf16.mxu0 %v2607_v41  ;;  %2235 = vmatprep.subr.bf16.mxu1 %v2607_v41  ;;  %v389_v30 = vpop.xlane.xlu0 %388 }
  0xc6   : > { %v2213_v31 = vpack.c.bf16 %v392_v29, %v389_v30  ;;  %v448_v29 = vld [vmem:[%s4099_s1 + $0xc8] sm:$0xff] }
  0xc7   : > { %v496_v30 = vld [vmem:[%s4099_s1 + $0x248] sm:$0xff] }
  0xc8   : > { %2211 = vmatpush1.bf16.msra.mxu0 %v2210_v28  ;;  %2247 = vmatpush1.bf16.msra.mxu1 %v2210_v28  ;;  %v398_v32 = vpop.xlane.xlu1 %397  ;;  %v493_v28 = vld [vmem:[%s4099_s1 + $0x230] sm:$0xff] }
  0xc9   : > { %2212 = vmatprep.subr.bf16.mxu0 %v2607_v41  ;;  %2236 = vmatprep.subr.bf16.mxu1 %v2607_v41  ;;  %v395_v33 = vpop.xlane.xlu0 %394 }
  0xca   : > { %v2216_v34 = vpack.c.bf16 %v398_v32, %v395_v33  ;;  %v495_v32 = vld [vmem:[%s4099_s1 + $0x240] sm:$0xff]  ;;  %v450_v33 = vld [vmem:[%s4099_s1 + $0xd8] sm:$0xff] }
  0xcc   : > { %2214 = vmatpush1.bf16.msra.mxu0 %v2213_v31  ;;  %2248 = vmatpush1.bf16.msra.mxu1 %v2213_v31  ;;  %v404_v35 = vpop.xlane.xlu1 %403  ;;  %v447_v31 = vld [vmem:[%s4099_s1 + $0xc0] sm:$0xff] }
  0xcd   : > { %2215 = vmatprep.subr.bf16.mxu0 %v2607_v41  ;;  %2237 = vmatprep.subr.bf16.mxu1 %v2607_v41  ;;  %v401_v36 = vpop.xlane.xlu0 %400 }
  0xce   : > { %v2219_v37 = vpack.c.bf16 %v404_v35, %v401_v36  ;;  %v449_v35 = vld [vmem:[%s4099_s1 + $0xd0] sm:$0xff] }
  0xcf   : > { %v497_v36 = vld [vmem:[%s4099_s1 + $0x250] sm:$0xff] }
  0xd0   : > { %2217 = vmatpush1.bf16.msra.mxu0 %v2216_v34  ;;  %2249 = vmatpush1.bf16.msra.mxu1 %v2216_v34  ;;  %v410_v38 = vpop.xlane.xlu1 %409  ;;  %v498_v34 = vld [vmem:[%s4099_s1 + $0x258] sm:$0xff] }
  0xd1   : > { %2218 = vmatprep.subr.bf16.mxu0 %v2607_v41  ;;  %2238 = vmatprep.subr.bf16.mxu1 %v2607_v41  ;;  %v407_v39 = vpop.xlane.xlu0 %406 }
  0xd2   : > { %v2222_v40 = vpack.c.bf16 %v410_v38, %v407_v39  ;;  %v500_v38 = vld [vmem:[%s4099_s1 + $0x268] sm:$0xff]  ;;  %v451_v39 = vld [vmem:[%s4099_s1 + $0xe0] sm:$0xff] }
  0xd4   : > { %2220 = vmatpush1.bf16.msra.mxu0 %v2219_v37  ;;  %2250 = vmatpush1.bf16.msra.mxu1 %v2219_v37  ;;  %v416_v42 = vpop.xlane.xlu1 %415  ;;  %v452_v37 = vld [vmem:[%s4099_s1 + $0xe8] sm:$0xff] }
  0xd5   : > { %2221 = vmatprep.subr.bf16.mxu0 %v2607_v41  ;;  %2239 = vmatprep.subr.bf16.mxu1 %v2607_v41  ;;  %v413_v43 = vpop.xlane.xlu0 %412 }
  0xd6   : > { %v2225_v44 = vpack.c.bf16 %v416_v42, %v413_v43  ;;  %v454_v42 = vld [vmem:[%s4099_s1 + $0xf8] sm:$0xff] }
  0xd7   : > { %v502_v43 = vld [vmem:[%s4099_s1 + $0x278] sm:$0xff] }
  0xd8   : > { %2223 = vmatpush1.bf16.msra.mxu0 %v2222_v40  ;;  %2251 = vmatpush1.bf16.msra.mxu1 %v2222_v40  ;;  %v422_v45 = vpop.xlane.xlu1 %421  ;;  %v499_v40 = vld [vmem:[%s4099_s1 + $0x260] sm:$0xff] }
  0xd9   : > { %2224 = vmatprep.subr.bf16.mxu0 %v2607_v41  ;;  %2240 = vmatprep.subr.bf16.mxu1 %v2607_v41  ;;  %v419_v46 = vpop.xlane.xlu0 %418 }
  0xda   : > { %v2228_v47 = vpack.c.bf16 %v422_v45, %v419_v46  ;;  %v501_v45 = vld [vmem:[%s4099_s1 + $0x270] sm:$0xff]  ;;  %v456_v46 = vld [vmem:[%s4099_s1 + $0x108] sm:$0xff] }
  0xdc   : > { %2226 = vmatpush1.bf16.msra.mxu0 %v2225_v44  ;;  %2252 = vmatpush1.bf16.msra.mxu1 %v2225_v44  ;;  %v453_v44 = vld [vmem:[%s4099_s1 + $0xf0] sm:$0xff] }
  0xdd   : > { %2227 = vmatprep.subr.bf16.mxu0 %v2607_v41  ;;  %2241 = vmatprep.subr.bf16.mxu1 %v2607_v41  ;;  %v425_v41 = vld [vmem:[%s4099_s1 + $0x10] sm:$0xff] }
  0xe0   : > { %2229 = vmatpush1.bf16.msra.mxu0 %v2228_v47  ;;  %2253 = vmatpush1.bf16.msra.mxu1 %v2228_v47  ;;  %v504_v47 = vld [vmem:[%s4099_s1 + $0x288] sm:$0xff] }
  0xe3   : > { %729 = vmatmul.mubr.f32.vlgmr.msra.gmra.mrb[0].mxu0 %v423_v48  ;;  %849 = vmatmul.mubr.f32.vlgmr.msra.gmra.mrb[0].mxu1 %v471_v49  ;;  %v455_v48 = vld [vmem:[%s4099_s1 + $0x100] sm:$0xff] }
  0xe4   : > { %2120 = vmatprep.mubr.msk.f32.mxu0 %vm519_vm0, %v426_v50  ;;  %2144 = vmatprep.mubr.msk.f32.mxu1 %vm519_vm0, %v474_v51  ;;  %v503_v49 = vld [vmem:[%s4099_s1 + $0x280] sm:$0xff]  ;;  %v458_v50 = vld [vmem:[%s4099_s1 + $0x118] sm:$0xff] }
  0xe5   : > { %v506_v51 = vld [vmem:[%s4099_s1 + $0x298] sm:$0xff] }
  0xe7   : > { %734 = vmatmul.mubr.f32.gmra.mrb[2].mxu0 %v425_v41  ;;  %854 = vmatmul.mubr.f32.gmra.mrb[2].mxu1 %v473_v52  ;;  %v457_v41 = vld [vmem:[%s4099_s1 + $0x110] sm:$0xff] }
  0xe8   : > { %2121 = vmatprep.mubr.msk.f32.mxu0 %vm519_vm0, %v428_v53  ;;  %2145 = vmatprep.mubr.msk.f32.mxu1 %vm519_vm0, %v476_v54  ;;  %v505_v52 = vld [vmem:[%s4099_s1 + $0x290] sm:$0xff]  ;;  %v460_v53 = vld [vmem:[%s4099_s1 + $0x128] sm:$0xff] }
  0xe9   : > { %v508_v54 = vld [vmem:[%s4099_s1 + $0x2a8] sm:$0xff] }
  0xeb   : > { %739 = vmatmul.mubr.f32.gmra.mrb[4].mxu0 %v427_v55  ;;  %859 = vmatmul.mubr.f32.gmra.mrb[4].mxu1 %v475_v56  ;;  %v459_v55 = vld [vmem:[%s4099_s1 + $0x120] sm:$0xff] }
  0xec   : > { %2122 = vmatprep.mubr.msk.f32.mxu0 %vm519_vm0, %v430_v57  ;;  %2146 = vmatprep.mubr.msk.f32.mxu1 %vm519_vm0, %v478_v58  ;;  %v507_v56 = vld [vmem:[%s4099_s1 + $0x2a0] sm:$0xff]  ;;  %v462_v57 = vld [vmem:[%s4099_s1 + $0x138] sm:$0xff] }
  0xed   : > { %v510_v58 = vld [vmem:[%s4099_s1 + $0x2b8] sm:$0xff] }
  0xef   : > { %744 = vmatmul.mubr.f32.gmra.mrb[6].mxu0 %v429_v59  ;;  %864 = vmatmul.mubr.f32.gmra.mrb[6].mxu1 %v477_v60  ;;  %v461_v59 = vld [vmem:[%s4099_s1 + $0x130] sm:$0xff] }
  0xf0   : > { %2123 = vmatprep.mubr.msk.f32.mxu0 %vm519_vm0, %v432_v61  ;;  %2147 = vmatprep.mubr.msk.f32.mxu1 %vm519_vm0, %v480_v62  ;;  %v509_v60 = vld [vmem:[%s4099_s1 + $0x2b0] sm:$0xff]  ;;  %v464_v61 = vld [vmem:[%s4099_s1 + $0x148] sm:$0xff] }
  0xf1   : > { %v512_v62 = vld [vmem:[%s4099_s1 + $0x2c8] sm:$0xff] }
  0xf3   : > { %749 = vmatmul.mubr.f32.gmra.mrb[8].mxu0 %v431_v63  ;;  %869 = vmatmul.mubr.f32.gmra.mrb[8].mxu1 %v479_v0  ;;  %v463_v63 = vld [vmem:[%s4099_s1 + $0x140] sm:$0xff] }
  0xf4   : > { %2124 = vmatprep.mubr.msk.f32.mxu0 %vm519_vm0, %v434_v1  ;;  %2148 = vmatprep.mubr.msk.f32.mxu1 %vm519_vm0, %v482_v2  ;;  %v511_v0 = vld [vmem:[%s4099_s1 + $0x2c0] sm:$0xff]  ;;  %v466_v1 = vld [vmem:[%s4099_s1 + $0x158] sm:$0xff] }
  0xf5   : > { %v514_v2 = vld [vmem:[%s4099_s1 + $0x2d8] sm:$0xff] }
  0xf7   : > { %754 = vmatmul.mubr.f32.gmra.mrb[10].mxu0 %v433_v3  ;;  %874 = vmatmul.mubr.f32.gmra.mrb[10].mxu1 %v481_v4  ;;  %v465_v3 = vld [vmem:[%s4099_s1 + $0x150] sm:$0xff] }
  0xf8   : > { %2125 = vmatprep.mubr.msk.f32.mxu0 %vm519_vm0, %v436_v5  ;;  %2149 = vmatprep.mubr.msk.f32.mxu1 %vm519_vm0, %v484_v6  ;;  %v513_v4 = vld [vmem:[%s4099_s1 + $0x2d0] sm:$0xff]  ;;  %v468_v5 = vld [vmem:[%s4099_s1 + $0x168] sm:$0xff] }
  0xf9   : > { %v516_v6 = vld [vmem:[%s4099_s1 + $0x2e8] sm:$0xff] }
  0xfb   : > { %759 = vmatmul.mubr.f32.gmra.mrb[12].mxu0 %v435_v7  ;;  %879 = vmatmul.mubr.f32.gmra.mrb[12].mxu1 %v483_v8  ;;  %v467_v7 = vld [vmem:[%s4099_s1 + $0x160] sm:$0xff] }
  0xfc   : > { %2126 = vmatprep.mubr.msk.f32.mxu0 %vm519_vm0, %v438_v9  ;;  %2150 = vmatprep.mubr.msk.f32.mxu1 %vm519_vm0, %v486_v10  ;;  %v515_v8 = vld [vmem:[%s4099_s1 + $0x2e0] sm:$0xff]  ;;  %v470_v9 = vld [vmem:[%s4099_s1 + $0x178] sm:$0xff] }
  0xfd   : > { %v518_v10 = vld [vmem:[%s4099_s1 + $0x2f8] sm:$0xff] }
  0xff   : > { %764 = vmatmul.mubr.f32.gmra.mrb[14].mxu0 %v437_v11  ;;  %884 = vmatmul.mubr.f32.gmra.mrb[14].mxu1 %v485_v12  ;;  %v469_v11 = vld [vmem:[%s4099_s1 + $0x170] sm:$0xff] }
 0x100   : > { %2127 = vmatprep.mubr.msk.f32.mxu0 %vm519_vm0, %v440_v13  ;;  %2151 = vmatprep.mubr.msk.f32.mxu1 %vm519_vm0, %v488_v14  ;;  %v517_v12 = vld [vmem:[%s4099_s1 + $0x2f0] sm:$0xff]  ;;  %v2608_v13 = vmov 0  }
 0x101   : > { %2301 = vset.pattern.permute.xlu0 %v2608_v13  ;;  %2302 = vset.pattern.permute.xlu1 %v2608_v13 }
 0x103   : > { %769 = vmatmul.mubr.f32.gmra.mrb[16].mxu0 %v439_v15  ;;  %889 = vmatmul.mubr.f32.gmra.mrb[16].mxu1 %v487_v16  ;;  %v1017_v15 = vld [vmem:[%s4100_s2] sm:$0xff] }
 0x104   : > { %2128 = vmatprep.mubr.msk.f32.mxu0 %vm519_vm0, %v442_v17  ;;  %2152 = vmatprep.mubr.msk.f32.mxu1 %vm519_vm0, %v490_v18  ;;  %v1041_v17 = vld [vmem:[%s4100_s2 + $0xc0] sm:$0xff] }
 0x107   : > { %774 = vmatmul.mubr.f32.gmra.mrb[18].mxu0 %v441_v19  ;;  %894 = vmatmul.mubr.f32.gmra.mrb[18].mxu1 %v489_v20 }
 0x108   : > { %2129 = vmatprep.mubr.msk.f32.mxu0 %vm519_vm0, %v444_v21  ;;  %2153 = vmatprep.mubr.msk.f32.mxu1 %vm519_vm0, %v492_v22 }
 0x10b   : > { %779 = vmatmul.mubr.f32.gmra.mrb[20].mxu0 %v443_v23  ;;  %899 = vmatmul.mubr.f32.gmra.mrb[20].mxu1 %v491_v24 }
 0x10c   : > { %2130 = vmatprep.mubr.msk.f32.mxu0 %vm519_vm0, %v446_v25  ;;  %2154 = vmatprep.mubr.msk.f32.mxu1 %vm519_vm0, %v494_v26  ;;  %v1018_v25 = vld [vmem:[%s4100_s2 + $0x8] sm:$0xff] }
 0x10f   : > { %784 = vmatmul.mubr.f32.gmra.mrb[22].mxu0 %v445_v27  ;;  %904 = vmatmul.mubr.f32.gmra.mrb[22].mxu1 %v493_v28  ;;  %v1042_v27 = vld [vmem:[%s4100_s2 + $0xc8] sm:$0xff] }
 0x110   : > { %2131 = vmatprep.mubr.msk.f32.mxu0 %vm519_vm0, %v448_v29  ;;  %2155 = vmatprep.mubr.msk.f32.mxu1 %vm519_vm0, %v496_v30 }
 0x113   : > { %789 = vmatmul.mubr.f32.gmra.mrb[24].mxu0 %v447_v31  ;;  %909 = vmatmul.mubr.f32.gmra.mrb[24].mxu1 %v495_v32 }
 0x114   : > { %2132 = vmatprep.mubr.msk.f32.mxu0 %vm519_vm0, %v450_v33  ;;  %2156 = vmatprep.mubr.msk.f32.mxu1 %vm519_vm0, %v498_v34 }
 0x117   : > { %794 = vmatmul.mubr.f32.gmra.mrb[26].mxu0 %v449_v35  ;;  %914 = vmatmul.mubr.f32.gmra.mrb[26].mxu1 %v497_v36 }
 0x118   : > { %2133 = vmatprep.mubr.msk.f32.mxu0 %vm519_vm0, %v452_v37  ;;  %2157 = vmatprep.mubr.msk.f32.mxu1 %vm519_vm0, %v500_v38  ;;  %v1019_v38 = vld [vmem:[%s4100_s2 + $0x10] sm:$0xff] }
 0x11b   : > { %799 = vmatmul.mubr.f32.gmra.mrb[28].mxu0 %v451_v39  ;;  %919 = vmatmul.mubr.f32.gmra.mrb[28].mxu1 %v499_v40  ;;  %v1043_v40 = vld [vmem:[%s4100_s2 + $0xd0] sm:$0xff] }
 0x11c   : > { %2134 = vmatprep.mubr.msk.f32.mxu0 %vm519_vm0, %v454_v42  ;;  %2158 = vmatprep.mubr.msk.f32.mxu1 %vm519_vm0, %v502_v43 }
 0x11f   : > { %804 = vmatmul.mubr.f32.gmra.mrb[30].mxu0 %v453_v44  ;;  %924 = vmatmul.mubr.f32.gmra.mrb[30].mxu1 %v501_v45 }
 0x120   : > { %2135 = vmatprep.mubr.msk.f32.mxu0 %vm519_vm0, %v456_v46  ;;  %2159 = vmatprep.mubr.msk.f32.mxu1 %vm519_vm0, %v504_v47 }
 0x123   : > { %809 = vmatmul.mubr.f32.gmra.mrb[32].mxu0 %v455_v48  ;;  %929 = vmatmul.mubr.f32.gmra.mrb[32].mxu1 %v503_v49 }
 0x124   : > { %2136 = vmatprep.mubr.msk.f32.mxu0 %vm519_vm0, %v458_v50  ;;  %2160 = vmatprep.mubr.msk.f32.mxu1 %vm519_vm0, %v506_v51 }
 0x127   : > { %814 = vmatmul.mubr.f32.gmra.mrb[34].mxu0 %v457_v41  ;;  %934 = vmatmul.mubr.f32.gmra.mrb[34].mxu1 %v505_v52  ;;  %v1020_v52 = vld [vmem:[%s4100_s2 + $0x18] sm:$0xff] }
 0x128   : > { %2137 = vmatprep.mubr.msk.f32.mxu0 %vm519_vm0, %v460_v53  ;;  %2161 = vmatprep.mubr.msk.f32.mxu1 %vm519_vm0, %v508_v54  ;;  %v1044_v54 = vld [vmem:[%s4100_s2 + $0xd8] sm:$0xff] }
 0x12b   : > { %819 = vmatmul.mubr.f32.gmra.mrb[36].mxu0 %v459_v55  ;;  %939 = vmatmul.mubr.f32.gmra.mrb[36].mxu1 %v507_v56 }
 0x12c   : > { %2138 = vmatprep.mubr.msk.f32.mxu0 %vm519_vm0, %v462_v57  ;;  %2162 = vmatprep.mubr.msk.f32.mxu1 %vm519_vm0, %v510_v58 }
 0x12f   : > { %824 = vmatmul.mubr.f32.gmra.mrb[38].mxu0 %v461_v59  ;;  %944 = vmatmul.mubr.f32.gmra.mrb[38].mxu1 %v509_v60 }
 0x130   : > { %2139 = vmatprep.mubr.msk.f32.mxu0 %vm519_vm0, %v464_v61  ;;  %2163 = vmatprep.mubr.msk.f32.mxu1 %vm519_vm0, %v512_v62 }
 0x133   : > { %829 = vmatmul.mubr.f32.gmra.mrb[40].mxu0 %v463_v63  ;;  %949 = vmatmul.mubr.f32.gmra.mrb[40].mxu1 %v511_v0 }
 0x134   : > { %2140 = vmatprep.mubr.msk.f32.mxu0 %vm519_vm0, %v466_v1  ;;  %2164 = vmatprep.mubr.msk.f32.mxu1 %vm519_vm0, %v514_v2  ;;  %v1021_v2 = vld [vmem:[%s4100_s2 + $0x20] sm:$0xff] }
 0x137   : > { %834 = vmatmul.mubr.f32.gmra.mrb[42].mxu0 %v465_v3  ;;  %954 = vmatmul.mubr.f32.gmra.mrb[42].mxu1 %v513_v4  ;;  %v1045_v4 = vld [vmem:[%s4100_s2 + $0xe0] sm:$0xff] }
 0x138   : > { %2141 = vmatprep.mubr.msk.f32.mxu0 %vm519_vm0, %v468_v5  ;;  %2165 = vmatprep.mubr.msk.f32.mxu1 %vm519_vm0, %v516_v6 }
 0x13b   : > { %839 = vmatmul.mubr.f32.gmra.mrb[44].mxu0 %v467_v7  ;;  %959 = vmatmul.mubr.f32.gmra.mrb[44].mxu1 %v515_v8 }
 0x13c   : > { %2142 = vmatprep.mubr.msk.f32.mxu0 %vm519_vm0, %v470_v9  ;;  %2166 = vmatprep.mubr.msk.f32.mxu1 %vm519_vm0, %v518_v10 }
 0x13f   : > { %844 = vmatmul.mubr.f32.gmra.mrb[46].mxu0 %v469_v11  ;;  %964 = vmatmul.mubr.f32.gmra.mrb[46].mxu1 %v517_v12 }
 0x1b6   : > { %v730_v14 = vpop.f32.mrb[0].mxu0  ;;  %v850_v16 = vpop.f32.mrb[0].mxu1 }
 0x1b7   : > { %v969_v18 = vmul.f32 0.00390625, %v730_v14  ;;  %v993_v19 = vmul.f32 0.00390625, %v850_v16  ;;  %v732_v20 = vpop.f32.mrb[1].mxu0  ;;  %v852_v21 = vpop.f32.mrb[1].mxu1  ;;  %v1022_v16 = vld [vmem:[%s4100_s2 + $0x28] sm:$0xff] }
 0x1b9   : > { %v3119_v22 = vadd.f32 %v1017_v15, %v969_v18  ;;  %v3121_v23 = vadd.f32 %v1041_v17, %v993_v19  ;;  %v1046_v18 = vld [vmem:[%s4100_s2 + $0xe8] sm:$0xff] }
 0x1ba   : > { %v735_v24 = vpop.f32.mrb[2].mxu0  ;;  %v855_v26 = vpop.f32.mrb[2].mxu1 }
 0x1bb   : > { %v1161_v28 = vand.u32 2147483647, %v3119_v22  ;;  %v1185_v29 = vand.u32 2147483647, %v3121_v23  ;;  %v970_v30 = vmul.f32 0.00390625, %v735_v24  ;;  %v994_v31 = vmul.f32 0.00390625, %v855_v26 }
 0x1bc   : > { %v737_v32 = vpop.f32.mrb[3].mxu0  ;;  %v857_v33 = vpop.f32.mrb[3].mxu1 }
 0x1bd   : > { %v1209_v34 = vadd.f32 %v1185_v29, %v1161_v28  ;;  %v3135_v35 = vadd.f32 %v1018_v25, %v970_v30  ;;  %v3137_v36 = vadd.f32 %v1042_v27, %v994_v31  ;;  %v1113_v33 = vld [vmem:[%s3194_s20] sm:$0xff] }
 0x1be   : > { %v740_v37 = vpop.f32.mrb[4].mxu0  ;;  %v860_v39 = vpop.f32.mrb[4].mxu1 }
 0x1bf   : > { %v1233_v42 = vadd.f32 1e-08, %v1209_v34  ;;  %v1162_v43 = vand.u32 2147483647, %v3135_v35  ;;  %v1186_v44 = vand.u32 2147483647, %v3137_v36 }
 0x1c0   : > { %v971_v45 = vmul.f32 0.00390625, %v740_v37  ;;  %v995_v46 = vmul.f32 0.00390625, %v860_v39  ;;  %v742_v47 = vpop.f32.mrb[5].mxu0  ;;  %v862_v48 = vpop.f32.mrb[5].mxu1  ;;  %v1137_v34 = vld [vmem:[%s3200_s29] sm:$0xff]  ;;  %v1024_v36 = vld [vmem:[%s4100_s2 + $0x38] sm:$0xff] }
 0x1c1   : > { %2303 = vrcp.f32 %v1233_v42  ;;  %v1210_v49 = vadd.f32 %v1186_v44, %v1162_v43  ;;  %v1047_v42 = vld [vmem:[%s4100_s2 + $0xf0] sm:$0xff] }
 0x1c2   : > { %v3151_v50 = vadd.f32 %v1019_v38, %v971_v45  ;;  %v3153_v51 = vadd.f32 %v1043_v40, %v995_v46  ;;  %v745_v41 = vpop.f32.mrb[6].mxu0  ;;  %v865_v53 = vpop.f32.mrb[6].mxu1 }
 0x1c3   : > { %v1234_v55 = vadd.f32 1e-08, %v1210_v49  ;;  %v972_v56 = vmul.f32 0.00390625, %v745_v41  ;;  %v996_v57 = vmul.f32 0.00390625, %v865_v53  ;;  %v747_v58 = vpop.f32.mrb[7].mxu0  ;;  %v867_v59 = vpop.f32.mrb[7].mxu1 }
 0x1c4   : > { %v1163_v60 = vand.u32 2147483647, %v3151_v50  ;;  %v1187_v61 = vand.u32 2147483647, %v3153_v51  ;;  %v1048_v51 = vld [vmem:[%s4100_s2 + $0xf8] sm:$0xff] }
 0x1c5   : > { %2305 = vrcp.f32 %v1234_v55  ;;  %v3163_v62 = vadd.f32 %v1020_v52, %v972_v56  ;;  %v3165_v63 = vadd.f32 %v1044_v54, %v996_v57  ;;  %v1114_v56 = vld [vmem:[%s3194_s20 + $0x8] sm:$0xff] }
 0x1c6   : > { %v1211_v0 = vadd.f32 %v1187_v61, %v1163_v60  ;;  %v750_v1 = vpop.f32.mrb[8].mxu0  ;;  %v870_v3 = vpop.f32.mrb[8].mxu1  ;;  %v1138_v57 = vld [vmem:[%s3200_s29 + $0x8] sm:$0xff] }
 0x1c7   : > { %v1164_v5 = vand.u32 2147483647, %v3163_v62  ;;  %v1188_v6 = vand.u32 2147483647, %v3165_v63  ;;  %v973_v7 = vmul.f32 0.00390625, %v750_v1  ;;  %v997_v8 = vmul.f32 0.00390625, %v870_v3 }
 0x1c8   : > { %v1235_v9 = vadd.f32 1e-08, %v1211_v0  ;;  %v752_v10 = vpop.f32.mrb[9].mxu0  ;;  %v872_v11 = vpop.f32.mrb[9].mxu1 }
 0x1c9   : > { %v1212_v12 = vadd.f32 %v1188_v6, %v1164_v5  ;;  %v3186_v13 = vadd.f32 %v1021_v2, %v973_v7  ;;  %v3188_v14 = vadd.f32 %v1045_v4, %v997_v8 }
 0x1ca   : > { %2307 = vrcp.f32 %v1235_v9  ;;  %v755_v15 = vpop.f32.mrb[10].mxu0  ;;  %v875_v17 = vpop.f32.mrb[10].mxu1 }
 0x1cb   : > { %v2304_v19 = vpop.eup %2303  ;;  %v1236_v20 = vadd.f32 1e-08, %v1212_v12  ;;  %v1165_v21 = vand.u32 2147483647, %v3186_v13  ;;  %v1189_v24 = vand.u32 2147483647, %v3188_v14 }
 0x1cc   : > { %v1258_v25 = vmul.f32 %v2304_v19, %v1161_v28  ;;  %v1329_v26 = vmul.f32 %v2304_v19, %v1185_v29  ;;  %v974_v27 = vmul.f32 0.00390625, %v755_v15  ;;  %v998_v30 = vmul.f32 0.00390625, %v875_v17  ;;  %v757_v31 = vpop.f32.mrb[11].mxu0  ;;  %v877_v32 = vpop.f32.mrb[11].mxu1  ;;  %v1023_v28 = vld [vmem:[%s4100_s2 + $0x30] sm:$0xff] }
 0x1cd   : > { %2309 = vrcp.f32 %v1236_v20  ;;  %v1213_v37 = vadd.f32 %v1189_v24, %v1165_v21  ;;  %v1115_v19 = vld [vmem:[%s3194_s20 + $0x10] sm:$0xff] }
 0x1ce   : > { %v1305_v38 = vmul.f32 5.0, %v1258_v25  ;;  %v1353_v39 = vmul.f32 5.0, %v1329_v26  ;;  %v3220_v40 = vadd.f32 %v1022_v16, %v974_v27  ;;  %v3222_v22 = vadd.f32 %v1046_v18, %v998_v30  ;;  %v760_v23 = vpop.f32.mrb[12].mxu0  ;;  %v880_v29 = vpop.f32.mrb[12].mxu1  ;;  %v1139_v20 = vld [vmem:[%s3200_s29 + $0x10] sm:$0xff] }
 0x1cf   : > { %v2306_v45 = vpop.eup %2305  ;;  %v1237_v46 = vadd.f32 1e-08, %v1213_v37  ;;  %v975_v47 = vmul.f32 0.00390625, %v760_v23  ;;  %v999_v48 = vmul.f32 0.00390625, %v880_v29  ;;  %v762_v49 = vpop.f32.mrb[13].mxu0 }
 0x1d0   : > { %v882_v41 = vpop.f32.mrb[13].mxu1  ;;  %v1377_v52 = vadd.f32 %v1305_v38, %v1113_v33  ;;  %v1401_v53 = vadd.f32 %v1353_v39, %v1137_v34  ;;  %v1260_v54 = vmul.f32 %v2306_v45, %v1162_v43  ;;  %v1330_v55 = vmul.f32 %v2306_v45, %v1186_v44  ;;  %v1140_v49 = vld [vmem:[%s3200_s29 + $0x18] sm:$0xff] }
 0x1d1   : > { %2311 = vrcp.f32 %v1237_v46  ;;  %v1166_v58 = vand.u32 2147483647, %v3220_v40  ;;  %v1190_v59 = vand.u32 2147483647, %v3222_v22  ;;  %v3238_v0 = vadd.f32 %v1023_v28, %v975_v47  ;;  %v1026_v22 = vld [vmem:[%s4100_s2 + $0x48] sm:$0xff] }
 0x1d2   : > { %v1425_v1 = vmax.f32 %v1377_v52, %v1401_v53  ;;  %v1306_v2 = vmul.f32 5.0, %v1260_v54  ;;  %v1354_v3 = vmul.f32 5.0, %v1330_v55  ;;  %v3240_v4 = vadd.f32 %v1047_v42, %v999_v48  ;;  %v765_v35 = vpop.f32.mrb[14].mxu0  ;;  %v885_v43 = vpop.f32.mrb[14].mxu1  ;;  %v1116_v48 = vld [vmem:[%s3194_s20 + $0x18] sm:$0xff] }
 0x1d3   : > { %v1214_v44 = vadd.f32 %v1190_v59, %v1166_v58  ;;  %v1167_v7 = vand.u32 2147483647, %v3238_v0  ;;  %v976_v8 = vmul.f32 0.00390625, %v765_v35  ;;  %v1000_v9 = vmul.f32 0.00390625, %v885_v43  ;;  %v767_v10 = vpop.f32.mrb[15].mxu0  ;;  %v887_v11 = vpop.f32.mrb[15].mxu1 }
 0x1d4   : > { %v2308_v12 = vpop.eup %2307  ;;  %v1449_v15 = vsub.f32 %v1377_v52, %v1425_v1  ;;  %v1521_v16 = vsub.f32 %v1401_v53, %v1425_v1  ;;  %v1378_v17 = vadd.f32 %v1306_v2, %v1114_v56  ;;  %v1402_v18 = vadd.f32 %v1354_v3, %v1138_v57  ;;  %v1117_v10 = vld [vmem:[%s3194_s20 + $0x20] sm:$0xff] }
 0x1d5   : > { %v1262_v25 = vmul.f32 %v2308_v12, %v1163_v60  ;;  %v1331_v26 = vmul.f32 %v2308_v12, %v1187_v61  ;;  %v1238_v27 = vadd.f32 1e-08, %v1214_v44  ;;  %v1191_v30 = vand.u32 2147483647, %v3240_v4  ;;  %v1141_v11 = vld [vmem:[%s3200_s29 + $0x20] sm:$0xff] }
 0x1d6   : > { %v1473_v31 = vmul.f32 1.442695, %v1449_v15  ;;  %v1545_v32 = vmul.f32 1.442695, %v1521_v16  ;;  %v1426_v33 = vmax.f32 %v1378_v17, %v1402_v18  ;;  %v3257_v34 = vadd.f32 %v1024_v36, %v976_v8  ;;  %v770_v37 = vpop.f32.mrb[16].mxu0  ;;  %v890_v38 = vpop.f32.mrb[16].mxu1 }
 0x1d7   : > { %v2310_v39 = vpop.eup %2309  ;;  %v1307_v23 = vmul.f32 5.0, %v1262_v25  ;;  %v1355_v28 = vmul.f32 5.0, %v1331_v26  ;;  %2313 = vrcp.f32 %v1238_v27  ;;  %v1215_v50 = vadd.f32 %v1191_v30, %v1167_v7  ;;  %v772_v60 = vpop.f32.mrb[17].mxu0  ;;  %v1025_v12 = vld [vmem:[%s4100_s2 + $0x40] sm:$0xff] }
 0x1d8   : > { %v892_v61 = vpop.f32.mrb[17].mxu1  ;;  %2315 = vpow2.f32 %v1473_v31  ;;  %v1450_v29 = vsub.f32 %v1378_v17, %v1426_v33  ;;  %v1522_v42 = vsub.f32 %v1402_v18, %v1426_v33  ;;  %v1264_v45 = vmul.f32 %v2310_v39, %v1164_v5  ;;  %v1118_v60 = vld [vmem:[%s3194_s20 + $0x28] sm:$0xff] }
 0x1d9   : > { %2317 = vpow2.f32 %v1545_v32  ;;  %v1379_v46 = vadd.f32 %v1307_v23, %v1115_v19  ;;  %v1403_v47 = vadd.f32 %v1355_v28, %v1139_v20  ;;  %v1332_v41 = vmul.f32 %v2310_v39, %v1188_v6  ;;  %v1049_v32 = vld [vmem:[%s4100_s2 + $0x100] sm:$0xff] }
 0x1da   : > { %v1475_v52 = vmul.f32 1.442695, %v1450_v29  ;;  %v1547_v53 = vmul.f32 1.442695, %v1522_v42  ;;  %v1308_v54 = vmul.f32 5.0, %v1264_v45  ;;  %v3272_v55 = vadd.f32 %v1048_v51, %v1000_v9  ;;  %v3274_v56 = vpop.f32.mrb[18].mxu0 }
 0x1db   : > { %v2312_v57 = vpop.eup %2311  ;;  %v1427_v1 = vmax.f32 %v1379_v46, %v1403_v47  ;;  %v1356_v62 = vmul.f32 5.0, %v1332_v41  ;;  %v1239_v5 = vadd.f32 1e-08, %v1215_v50  ;;  %v1168_v2 = vand.u32 2147483647, %v3257_v34  ;;  %v3277_v3 = vpop.f32.mrb[18].mxu1 }
 0x1dc   : > { %2319 = vpow2.f32 %v1475_v52  ;;  %v1380_v63 = vadd.f32 %v1308_v54, %v1116_v48  ;;  %v1266_v6 = vmul.f32 %v2312_v57, %v1165_v21  ;;  %v1333_v35 = vmul.f32 %v2312_v57, %v1189_v24  ;;  %v777_v36 = vpop.f32.mrb[19].mxu0  ;;  %v897_v43 = vpop.f32.mrb[19].mxu1 }
 0x1dd   : > { %2321 = vpow2.f32 %v1547_v53  ;;  %v1451_v44 = vsub.f32 %v1379_v46, %v1427_v1  ;;  %v1523_v8 = vsub.f32 %v1403_v47, %v1427_v1  ;;  %v1404_v9 = vadd.f32 %v1356_v62, %v1140_v49  ;;  %v1142_v53 = vld [vmem:[%s3200_s29 + $0x28] sm:$0xff] }
 0x1de   : > { %v1309_v15 = vmul.f32 5.0, %v1266_v6  ;;  %v1357_v16 = vmul.f32 5.0, %v1333_v35  ;;  %2323 = vrcp.f32 %v1239_v5  ;;  %v1192_v13 = vand.u32 2147483647, %v3272_v55  ;;  %v780_v21 = vpop.f32.mrb[20].mxu0  ;;  %v900_v14 = vpop.f32.mrb[20].mxu1 }
 0x1df   : > { %v1477_v24 = vmul.f32 1.442695, %v1451_v44  ;;  %v1549_v17 = vmul.f32 1.442695, %v1523_v8  ;;  %v1428_v18 = vmax.f32 %v1380_v63, %v1404_v9  ;;  %v977_v19 = vmul.f32 0.00390625, %v770_v37  ;;  %v782_v20 = vpop.f32.mrb[21].mxu0 }
 0x1e0   : > { %v1381_v25 = vadd.f32 %v1309_v15, %v1117_v10  ;;  %v1405_v26 = vadd.f32 %v1357_v16, %v1141_v11  ;;  %v1216_v27 = vadd.f32 %v1192_v13, %v1168_v2  ;;  %v1001_v31 = vmul.f32 0.00390625, %v890_v38  ;;  %v902_v33 = vpop.f32.mrb[21].mxu1  ;;  %v1050_v10 = vld [vmem:[%s4100_s2 + $0x108] sm:$0xff]  ;;  %v1027_v11 = vld [vmem:[%s4100_s2 + $0x50] sm:$0xff] }
 0x1e1   : > { %v2314_v39 = vpop.eup %2313  ;;  %2325 = vpow2.f32 %v1477_v24  ;;  %v1452_v23 = vsub.f32 %v1380_v63, %v1428_v18  ;;  %v1524_v28 = vsub.f32 %v1404_v9, %v1428_v18  ;;  %v3296_v37 = vadd.f32 %v1025_v12, %v977_v19  ;;  %v1119_v20 = vld [vmem:[%s3194_s20 + $0x30] sm:$0xff] }
 0x1e2   : > { %v3298_v50 = vpop.eup %2315  ;;  %2327 = vpow2.f32 %v1549_v17  ;;  %v1429_v51 = vmax.f32 %v1381_v25, %v1405_v26  ;;  %v1268_v38 = vmul.f32 %v2314_v39, %v1166_v58  ;;  %v1334_v61 = vmul.f32 %v2314_v39, %v1190_v59  ;;  %v3305_v29 = vpop.f32.mrb[22].mxu0 }
 0x1e3   : > { %v3307_v42 = vpop.f32.mrb[22].mxu1  ;;  %v3309_v45 = vpop.eup %2317  ;;  %v1479_v46 = vmul.f32 1.442695, %v1452_v23  ;;  %v1551_v47 = vmul.f32 1.442695, %v1524_v28  ;;  %v3311_v49 = vadd.f32 %v1049_v32, %v1001_v31  ;;  %v978_v62 = vmul.f32 0.00390625, %v3274_v56 }
 0x1e4   : > { %v1240_v48 = vadd.f32 1e-08, %v1216_v27  ;;  %v1453_v41 = vsub.f32 %v1381_v25, %v1429_v51  ;;  %v1525_v52 = vsub.f32 %v1405_v26, %v1429_v51  ;;  %v1310_v54 = vmul.f32 5.0, %v1268_v38  ;;  %v787_v58 = vpop.f32.mrb[23].mxu0  ;;  %v907_v59 = vpop.f32.mrb[23].mxu1  ;;  %v1143_v25 = vld [vmem:[%s3200_s29 + $0x30] sm:$0xff] }
 0x1e5   : > { %v1358_v40 = vmul.f32 5.0, %v1334_v61  ;;  %2329 = vpow2.f32 %v1479_v46  ;;  %v1169_v57 = vand.u32 2147483647, %v3296_v37  ;;  %v1193_v1 = vand.u32 2147483647, %v3311_v49  ;;  %v1051_v31 = vld [vmem:[%s4100_s2 + $0x110] sm:$0xff] }
 0x1e6   : > { %v3320_v5 = vpop.eup %2319  ;;  %2331 = vpow2.f32 %v1551_v47  ;;  %v1481_v63 = vmul.f32 1.442695, %v1453_v41  ;;  %v1553_v6 = vmul.f32 1.442695, %v1525_v52  ;;  %v1382_v35 = vadd.f32 %v1310_v54, %v1118_v60  ;;  %v790_v36 = vpop.f32.mrb[24].mxu0  ;;  %v1028_v47 = vld [vmem:[%s4100_s2 + $0x58] sm:$0xff] }
 0x1e7   : > { %v910_v43 = vpop.f32.mrb[24].mxu1  ;;  %v3322_v44 = vpop.eup %2321  ;;  %v1406_v8 = vadd.f32 %v1358_v40, %v1142_v53  ;;  %2333 = vrcp.f32 %v1240_v48  ;;  %v1217_v9 = vadd.f32 %v1193_v1, %v1169_v57  ;;  %v3328_v56 = vadd.f32 %v1026_v22, %v978_v62  ;;  %v1052_v54 = vld [vmem:[%s4100_s2 + $0x118] sm:$0xff]  ;;  %v1029_v40 = vld [vmem:[%s4100_s2 + $0x60] sm:$0xff] }
 0x1e8   : > { %v792_v12 = vpop.f32.mrb[25].mxu0  ;;  %v912_v15 = vpop.f32.mrb[25].mxu1  ;;  %2335 = vpow2.f32 %v1481_v63  ;;  %v1002_v24 = vmul.f32 0.00390625, %v3277_v3  ;;  %v979_v17 = vmul.f32 0.00390625, %v780_v21  ;;  %v1003_v18 = vmul.f32 0.00390625, %v900_v14 }
 0x1e9   : > { %v2324_v16 = vpop.eup %2323  ;;  %2337 = vpow2.f32 %v1553_v6  ;;  %v1430_v19 = vmax.f32 %v1382_v35, %v1406_v8  ;;  %v1241_v32 = vadd.f32 1e-08, %v1217_v9  ;;  %v1170_v33 = vand.u32 2147483647, %v3328_v56  ;;  %v1055_v56 = vld [vmem:[%s4100_s2 + $0x130] sm:$0xff] }
 0x1ea   : > { %v1270_v26 = vmul.f32 %v2324_v16, %v1167_v7  ;;  %v1335_v27 = vmul.f32 %v2324_v16, %v1191_v30  ;;  %v3347_v3 = vadd.f32 %v1050_v10, %v1002_v24  ;;  %v3349_v21 = vadd.f32 %v1027_v11, %v979_v17  ;;  %v3351_v14 = vpop.f32.mrb[26].mxu0  ;;  %v3353_v39 = vpop.f32.mrb[26].mxu1  ;;  %v1053_v24 = vld [vmem:[%s4100_s2 + $0x120] sm:$0xff] }
 0x1eb   : > { %v3355_v0 = vpop.eup %2325  ;;  %v1454_v7 = vsub.f32 %v1382_v35, %v1430_v19  ;;  %v1526_v4 = vsub.f32 %v1406_v8, %v1430_v19  ;;  %v797_v28 = vpop.f32.mrb[27].mxu0  ;;  %2339 = vrcp.f32 %v1241_v32  ;;  %v3361_v46 = vadd.f32 %v1051_v31, %v1003_v18  ;;  %v1120_v18 = vld [vmem:[%s3194_s20 + $0x38] sm:$0xff] }
 0x1ec   : > { %v1311_v30 = vmul.f32 5.0, %v1270_v26  ;;  %v1359_v23 = vmul.f32 5.0, %v1335_v27  ;;  %v917_v51 = vpop.f32.mrb[27].mxu1  ;;  %v3357_v60 = vpop.eup %2327  ;;  %v1194_v38 = vand.u32 2147483647, %v3347_v3  ;;  %v980_v59 = vmul.f32 0.00390625, %v3305_v29 }
 0x1ed   : > { %v1171_v61 = vand.u32 2147483647, %v3349_v21  ;;  %v1483_v48 = vmul.f32 1.442695, %v1454_v7  ;;  %v1555_v41 = vmul.f32 1.442695, %v1526_v4 }
 0x1ee   : > { %v1383_v52 = vadd.f32 %v1311_v30, %v1119_v20  ;;  %v1407_v53 = vadd.f32 %v1359_v23, %v1143_v25  ;;  %v1218_v22 = vadd.f32 %v1194_v38, %v1170_v33  ;;  %v1195_v58 = vand.u32 2147483647, %v3361_v46  ;;  %v3379_v63 = vpop.f32.mrb[28].mxu0  ;;  %v3381_v6 = vpop.f32.mrb[28].mxu1  ;;  %v1144_v26 = vld [vmem:[%s3200_s29 + $0x38] sm:$0xff]  ;;  %v1030_v7 = vld [vmem:[%s4100_s2 + $0x68] sm:$0xff] }
 0x1ef   : > { %v1004_v62 = vmul.f32 0.00390625, %v3307_v42  ;;  %v3383_v35 = vpop.eup %2329  ;;  %2341 = vpow2.f32 %v1483_v48  ;;  %v981_v9 = vmul.f32 0.00390625, %v790_v36  ;;  %v1005_v10 = vmul.f32 0.00390625, %v910_v43  ;;  %v802_v11 = vpop.f32.mrb[29].mxu0 }
 0x1f0   : > { %v1431_v8 = vmax.f32 %v1383_v52, %v1407_v53  ;;  %v922_v12 = vpop.f32.mrb[29].mxu1  ;;  %v3385_v15 = vpop.eup %2331  ;;  %2343 = vpow2.f32 %v1555_v41  ;;  %v1242_v29 = vadd.f32 1e-08, %v1218_v22  ;;  %v1219_v42 = vadd.f32 %v1195_v58, %v1171_v61 }
 0x1f1   : > { %v3391_v16 = vadd.f32 %v1028_v47, %v980_v59  ;;  %v2334_v36 = vpop.eup %2333  ;;  %v3397_v19 = vadd.f32 %v1052_v54, %v1004_v62  ;;  %v3399_v20 = vadd.f32 %v1029_v40, %v981_v9  ;;  %v982_v54 = vmul.f32 0.00390625, %v3351_v14 }
 0x1f2   : > { %v1455_v43 = vsub.f32 %v1383_v52, %v1431_v8  ;;  %v1527_v17 = vsub.f32 %v1407_v53, %v1431_v8  ;;  %v3401_v25 = vpop.eup %2335  ;;  %v1272_v27 = vmul.f32 %v2334_v36, %v1168_v2  ;;  %v1336_v31 = vmul.f32 %v2334_v36, %v1192_v13  ;;  %v3411_v4 = vpop.f32.mrb[30].mxu0 }
 0x1f3   : > { %2345 = vrcp.f32 %v1242_v29  ;;  %v1243_v32 = vadd.f32 1e-08, %v1219_v42  ;;  %v3413_v30 = vpop.f32.mrb[30].mxu1  ;;  %v3415_v23 = vpop.eup %2337  ;;  %v1172_v34 = vand.u32 2147483647, %v3391_v16  ;;  %v3418_v2 = vadd.f32 %v1053_v24, %v1005_v10  ;;  %v1121_v10 = vld [vmem:[%s3194_s20 + $0x40] sm:$0xff] }
 0x1f4   : > { %v1485_v28 = vmul.f32 1.442695, %v1455_v43  ;;  %v1557_v51 = vmul.f32 1.442695, %v1527_v17  ;;  %v1312_v55 = vmul.f32 5.0, %v1272_v27  ;;  %v1360_v13 = vmul.f32 5.0, %v1336_v31 }
 0x1f5   : > { %2347 = vrcp.f32 %v1243_v32  ;;  %v1196_v47 = vand.u32 2147483647, %v3397_v19  ;;  %v807_v48 = vpop.f32.mrb[31].mxu0  ;;  %v927_v41 = vpop.f32.mrb[31].mxu1  ;;  %v1173_v52 = vand.u32 2147483647, %v3399_v20  ;;  %v3441_v29 = vadd.f32 %v1030_v7, %v982_v54 }
 0x1f6   : > { %2349 = vpow2.f32 %v1485_v28  ;;  %v1197_v53 = vand.u32 2147483647, %v3418_v2  ;;  %v2340_v40 = vpop.eup %2339  ;;  %v1384_v22 = vadd.f32 %v1312_v55, %v1120_v18  ;;  %v1408_v59 = vadd.f32 %v1360_v13, %v1144_v26  ;;  %v3428_v8 = vpop.f32.mrb[32].mxu0  ;;  %v1054_v42 = vld [vmem:[%s4100_s2 + $0x128] sm:$0xff]  ;;  %v1145_v17 = vld [vmem:[%s3200_s29 + $0x40] sm:$0xff]  ;;  %v1056_v19 = vld [vmem:[%s4100_s2 + $0x138] sm:$0xff] }
 0x1f7   : > { %2351 = vpow2.f32 %v1557_v51  ;;  %v1220_v62 = vadd.f32 %v1196_v47, %v1172_v34  ;;  %v3430_v9 = vpop.f32.mrb[32].mxu1  ;;  %v1274_v11 = vmul.f32 %v2340_v40, %v1169_v57  ;;  %v1337_v14 = vmul.f32 %v2340_v40, %v1193_v1  ;;  %v812_v24 = vpop.f32.mrb[33].mxu0  ;;  %v1031_v1 = vld [vmem:[%s4100_s2 + $0x70] sm:$0xff] }
 0x1f8   : > { %v1221_v12 = vadd.f32 %v1197_v53, %v1173_v52  ;;  %v932_v36 = vpop.f32.mrb[33].mxu1  ;;  %v1432_v43 = vmax.f32 %v1384_v22, %v1408_v59  ;;  %v1006_v57 = vmul.f32 0.00390625, %v3353_v39  ;;  %v983_v49 = vmul.f32 0.00390625, %v3379_v63 }
 0x1f9   : > { %v1244_v37 = vadd.f32 1e-08, %v1220_v62  ;;  %v3452_v18 = vpop.eup %2341  ;;  %v1313_v26 = vmul.f32 5.0, %v1274_v11  ;;  %v1361_v27 = vmul.f32 5.0, %v1337_v14  ;;  %v1174_v32 = vand.u32 2147483647, %v3441_v29 }
 0x1fa   : > { %v1245_v31 = vadd.f32 1e-08, %v1221_v12  ;;  %v3455_v7 = vpop.eup %2343  ;;  %v1456_v28 = vsub.f32 %v1384_v22, %v1432_v43  ;;  %v1528_v51 = vsub.f32 %v1408_v59, %v1432_v43  ;;  %v3457_v55 = vadd.f32 %v1054_v42, %v1006_v57  ;;  %v3459_v39 = vpop.f32.mrb[34].mxu0  ;;  %v1122_v43 = vld [vmem:[%s3194_s20 + $0x48] sm:$0xff] }
 0x1fb   : > { %2353 = vrcp.f32 %v1244_v37  ;;  %v3461_v63 = vpop.f32.mrb[34].mxu1  ;;  %v1385_v13 = vadd.f32 %v1313_v26, %v1121_v10  ;;  %v1409_v48 = vadd.f32 %v1361_v27, %v1145_v17  ;;  %v3463_v41 = vadd.f32 %v1031_v1, %v983_v49  ;;  %v817_v54 = vpop.f32.mrb[35].mxu0  ;;  %v1146_v1 = vld [vmem:[%s3200_s29 + $0x48] sm:$0xff] }
 0x1fc   : > { %2355 = vrcp.f32 %v1245_v31  ;;  %v937_v40 = vpop.f32.mrb[35].mxu1  ;;  %v1487_v11 = vmul.f32 1.442695, %v1456_v28  ;;  %v1559_v14 = vmul.f32 1.442695, %v1528_v51  ;;  %v3468_v59 = vadd.f32 %v3309_v45, %v3298_v50 }
 0x1fd   : > { %v2346_v62 = vpop.eup %2345  ;;  %v1198_v22 = vand.u32 2147483647, %v3457_v55  ;;  %v1433_v12 = vmax.f32 %v1385_v13, %v1409_v48  ;;  %v4106_v24 = vand.u32 2147483647, %v3463_v41  ;;  %v1007_v45 = vmul.f32 0.00390625, %v3381_v6 }
 0x1fe   : > { %v1276_v10 = vmul.f32 %v2346_v62, %v1170_v33  ;;  %v1338_v42 = vmul.f32 %v2346_v62, %v1194_v38  ;;  %2357 = vpow2.f32 %v1487_v11  ;;  %v984_v33 = vmul.f32 0.00390625, %v3411_v4  ;;  %v3485_v3 = vpop.f32.mrb[36].mxu0  ;;  %v3487_v38 = vpop.f32.mrb[36].mxu1  ;;  %v1123_v11 = vld [vmem:[%s3194_s20 + $0x50] sm:$0xff] }
 0x1ff   : > { %v2348_v36 = vpop.eup %2347  ;;  %v1222_v17 = vadd.f32 %v1198_v22, %v1174_v32  ;;  %2359 = vpow2.f32 %v1559_v14  ;;  %v1457_v57 = vsub.f32 %v1385_v13, %v1433_v12  ;;  %v1529_v49 = vsub.f32 %v1409_v48, %v1433_v12  ;;  %v822_v6 = vpop.f32.mrb[37].mxu0  ;;  %v1032_v13 = vld [vmem:[%s4100_s2 + $0x78] sm:$0xff]  ;;  %v1147_v14 = vld [vmem:[%s3200_s29 + $0x50] sm:$0xff] }
 0x200   : > { %v3489_v37 = vpop.eup %2349  ;;  %v1314_v26 = vmul.f32 5.0, %v1276_v10  ;;  %v942_v27 = vpop.f32.mrb[37].mxu1  ;;  %v1362_v28 = vmul.f32 5.0, %v1338_v42  ;;  %v1278_v4 = vmul.f32 %v2348_v36, %v1171_v61  ;;  %v1339_v51 = vmul.f32 %v2348_v36, %v1195_v58 }
 0x201   : > { %v3492_v31 = vpop.eup %2351  ;;  %v1246_v54 = vadd.f32 1e-08, %v1222_v17  ;;  %v1489_v40 = vmul.f32 1.442695, %v1457_v57  ;;  %v1561_v48 = vmul.f32 1.442695, %v1529_v49  ;;  %v3503_v12 = vadd.f32 %v1055_v56, %v1007_v45 }
 0x202   : > { %v1386_v62 = vadd.f32 %v1314_v26, %v1122_v43  ;;  %v1410_v10 = vadd.f32 %v1362_v28, %v1146_v1  ;;  %v1315_v42 = vmul.f32 5.0, %v1278_v4  ;;  %v1363_v6 = vmul.f32 5.0, %v1339_v51  ;;  %v3505_v21 = vpop.f32.mrb[38].mxu0  ;;  %v3507_v61 = vpop.f32.mrb[38].mxu1 }
 0x203   : > { %2361 = vrcp.f32 %v1246_v54  ;;  %v4105_v46 = vand.u32 2147483647, %v3503_v12  ;;  %v3510_v58 = vadd.f32 %v1032_v13, %v984_v33  ;;  %v1008_v36 = vmul.f32 0.00390625, %v3413_v30  ;;  %v827_v43 = vpop.f32.mrb[39].mxu0  ;;  %v947_v17 = vpop.f32.mrb[39].mxu1  ;;  %v1124_v54 = vld [vmem:[%s3194_s20 + $0x58] sm:$0xff] }
 0x204   : > { %2363 = vpow2.f32 %v1489_v40  ;;  %v1434_v56 = vmax.f32 %v1386_v62, %v1410_v10  ;;  %v1387_v57 = vadd.f32 %v1315_v42, %v1123_v11  ;;  %v1411_v49 = vadd.f32 %v1363_v6, %v1147_v14  ;;  %v1148_v13 = vld [vmem:[%s3200_s29 + $0x58] sm:$0xff]  ;;  %v1125_v17 = vld [vmem:[%s3194_s20 + $0x60] sm:$0xff] }
 0x205   : > { %v2354_v45 = vpop.eup %2353  ;;  %2365 = vpow2.f32 %v1561_v48  ;;  %v1223_v30 = vadd.f32 %v4105_v46, %v4106_v24  ;;  %v1176_v33 = vand.u32 2147483647, %v3510_v58 }
 0x206   : > { %v2356_v1 = vpop.eup %2355  ;;  %v1280_v26 = vmul.f32 %v2354_v45, %v1172_v34  ;;  %v1340_v27 = vmul.f32 %v2354_v45, %v1196_v47  ;;  %v1458_v28 = vsub.f32 %v1386_v62, %v1434_v56  ;;  %v1530_v4 = vsub.f32 %v1410_v10, %v1434_v56  ;;  %v3529_v34 = vpop.f32.mrb[40].mxu0  ;;  %v1149_v45 = vld [vmem:[%s3200_s29 + $0x60] sm:$0xff] }
 0x207   : > { %v1435_v51 = vmax.f32 %v1387_v57, %v1411_v49  ;;  %v1282_v16 = vmul.f32 %v2356_v1, %v1173_v52  ;;  %v3531_v47 = vpop.f32.mrb[40].mxu1  ;;  %v1341_v62 = vmul.f32 %v2356_v1, %v1197_v53  ;;  %v1247_v11 = vadd.f32 1e-08, %v1223_v30  ;;  %v832_v14 = vpop.f32.mrb[41].mxu0 }
 0x208   : > { %v1316_v40 = vmul.f32 5.0, %v1280_v26  ;;  %v1364_v48 = vmul.f32 5.0, %v1340_v27  ;;  %v952_v10 = vpop.f32.mrb[41].mxu1  ;;  %v3535_v20 = vpop.eup %2357  ;;  %v1491_v52 = vmul.f32 1.442695, %v1458_v28  ;;  %v3541_v1 = vadd.f32 %v1056_v19, %v1008_v36 }
 0x209   : > { %v1563_v42 = vmul.f32 1.442695, %v1530_v4  ;;  %v1459_v6 = vsub.f32 %v1387_v57, %v1435_v51  ;;  %v1531_v43 = vsub.f32 %v1411_v49, %v1435_v51  ;;  %v3539_v56 = vpop.eup %2359  ;;  %v1317_v26 = vmul.f32 5.0, %v1282_v16  ;;  %v1033_v10 = vld [vmem:[%s4100_s2 + $0x80] sm:$0xff] }
 0x20a   : > { %v1388_v46 = vadd.f32 %v1316_v40, %v1124_v54  ;;  %v1412_v24 = vadd.f32 %v1364_v48, %v1148_v13  ;;  %v1365_v27 = vmul.f32 5.0, %v1341_v62  ;;  %2367 = vpow2.f32 %v1491_v52  ;;  %v3543_v30 = vpop.f32.mrb[42].mxu0  ;;  %v3545_v14 = vpop.f32.mrb[42].mxu1 }
 0x20b   : > { %v1493_v2 = vmul.f32 1.442695, %v1459_v6  ;;  %v1565_v53 = vmul.f32 1.442695, %v1531_v43  ;;  %2369 = vpow2.f32 %v1563_v42  ;;  %v1389_v49 = vadd.f32 %v1317_v26, %v1125_v17  ;;  %v837_v4 = vpop.f32.mrb[43].mxu0  ;;  %v957_v51 = vpop.f32.mrb[43].mxu1 }
 0x20c   : > { %v1436_v57 = vmax.f32 %v1388_v46, %v1412_v24  ;;  %v1413_v28 = vadd.f32 %v1365_v27, %v1149_v45  ;;  %v1200_v13 = vand.u32 2147483647, %v3541_v1  ;;  %v985_v16 = vmul.f32 0.00390625, %v3428_v8  ;;  %v1126_v42 = vld [vmem:[%s3194_s20 + $0x68] sm:$0xff]  ;;  %v1152_v1 = vld [vmem:[%s3200_s29 + $0x78] sm:$0xff] }
 0x20d   : > { %v2362_v54 = vpop.eup %2361  ;;  %2371 = vpow2.f32 %v1493_v2  ;;  %v1009_v36 = vmul.f32 0.00390625, %v3430_v9  ;;  %v1150_v6 = vld [vmem:[%s3200_s29 + $0x68] sm:$0xff] }
 0x20e   : > { %v3550_v19 = vpop.eup %2363  ;;  %2373 = vpow2.f32 %v1565_v53  ;;  %v1460_v40 = vsub.f32 %v1388_v46, %v1436_v57  ;;  %v1532_v48 = vsub.f32 %v1412_v24, %v1436_v57  ;;  %v1437_v62 = vmax.f32 %v1389_v49, %v1413_v28  ;;  %v1057_v24 = vld [vmem:[%s4100_s2 + $0x140] sm:$0xff]  ;;  %v3570_v46 = vpop.f32.mrb[44].mxu0 }
 0x20f   : > { %v3555_v52 = vpop.eup %2365  ;;  %v1284_v43 = vmul.f32 %v2362_v54, %v1174_v32  ;;  %v1342_v8 = vmul.f32 %v2362_v54, %v1198_v22  ;;  %2375 = vrcp.f32 %v1247_v11  ;;  %v1224_v9 = vadd.f32 %v1200_v13, %v1176_v33  ;;  %v3572_v17 = vpop.f32.mrb[44].mxu1  ;;  %v1034_v54 = vld [vmem:[%s4100_s2 + $0x88] sm:$0xff] }
 0x210   : > { %v1495_v45 = vmul.f32 1.442695, %v1460_v40  ;;  %v1567_v29 = vmul.f32 1.442695, %v1532_v48  ;;  %v1461_v32 = vsub.f32 %v1389_v49, %v1437_v62  ;;  %v1533_v26 = vsub.f32 %v1413_v28, %v1437_v62  ;;  %v842_v55 = vpop.f32.mrb[45].mxu0  ;;  %v962_v22 = vpop.f32.mrb[45].mxu1 }
 0x211   : > { %v1318_v11 = vmul.f32 5.0, %v1284_v43  ;;  %v1366_v27 = vmul.f32 5.0, %v1342_v8  ;;  %v1248_v2 = vadd.f32 1e-08, %v1224_v9  ;;  %v3574_v53 = vadd.f32 %v1033_v10, %v985_v16  ;;  %v1058_v48 = vld [vmem:[%s4100_s2 + $0x148] sm:$0xff]  ;;  %v1035_v16 = vld [vmem:[%s4100_s2 + $0x90] sm:$0xff] }
 0x212   : > { %2377 = vpow2.f32 %v1495_v45  ;;  %v1497_v57 = vmul.f32 1.442695, %v1461_v32  ;;  %v1569_v4 = vmul.f32 1.442695, %v1533_v26  ;;  %v3576_v51 = vadd.f32 %v1057_v24, %v1009_v36  ;;  %v3588_v62 = vpop.f32.mrb[46].mxu0  ;;  %v3590_v36 = vpop.f32.mrb[46].mxu1 }
 0x213   : > { %2379 = vpow2.f32 %v1567_v29  ;;  %v1390_v40 = vadd.f32 %v1318_v11, %v1126_v42  ;;  %v1414_v49 = vadd.f32 %v1366_v27, %v1150_v6  ;;  %v4114_v28 = vand.u32 2147483647, %v3574_v53  ;;  %v847_v43 = vpop.f32.mrb[47].mxu0  ;;  %v967_v8 = vpop.f32.mrb[47].mxu1 }
 0x214   : > { %2381 = vpow2.f32 %v1497_v57  ;;  %v4113_v10 = vand.u32 2147483647, %v3576_v51  ;;  %v986_v42 = vmul.f32 0.00390625, %v3459_v39  ;;  %v1010_v6 = vmul.f32 0.00390625, %v3461_v63  ;;  %v3595_v9 = vpop.eup %2367  ;;  %v1059_v8 = vld [vmem:[%s4100_s2 + $0x150] sm:$0xff] }
 0x215   : > { %2383 = vpow2.f32 %v1569_v4  ;;  %v1438_v24 = vmax.f32 %v1390_v40, %v1414_v49  ;;  %v1594_v45 = vadd.f32 %v3322_v44, %v3320_v5  ;;  %v987_v29 = vmul.f32 0.00390625, %v3485_v3  ;;  %v3600_v32 = vpop.eup %2369 }
 0x216   : > { %2385 = vrcp.f32 %v1248_v2  ;;  %v1225_v39 = vadd.f32 %v4113_v10, %v4114_v28  ;;  %v3606_v63 = vadd.f32 %v1034_v54, %v986_v42  ;;  %v3608_v26 = vadd.f32 %v1058_v48, %v1010_v6 }
 0x217   : > { %v3610_v55 = vpop.eup %2371  ;;  %v1462_v22 = vsub.f32 %v1390_v40, %v1438_v24  ;;  %v1534_v11 = vsub.f32 %v1414_v49, %v1438_v24  ;;  %2387 = vrcp.f32 %v3468_v59  ;;  %v3613_v44 = vadd.f32 %v1035_v16, %v987_v29  ;;  %v1151_v24 = vld [vmem:[%s3200_s29 + $0x70] sm:$0xff] }
 0x218   : > { %v3615_v3 = vpop.eup %2373  ;;  %v1249_v27 = vadd.f32 1e-08, %v1225_v39  ;;  %v4108_v2 = vand.u32 2147483647, %v3606_v63  ;;  %v4107_v57 = vand.u32 2147483647, %v3608_v26  ;;  %2389 = vrcp.f32 %v1594_v45 }
 0x219   : > { %v2376_v4 = vpop.eup %2375  ;;  %v1499_v54 = vmul.f32 1.442695, %v1462_v22  ;;  %v1571_v48 = vmul.f32 1.442695, %v1534_v11  ;;  %v4112_v40 = vand.u32 2147483647, %v3613_v44  ;;  %v1595_v59 = vadd.f32 %v3357_v60, %v3355_v0 }
 0x21a   : > { %v4117_v49 = vand.u32 2147483647, %v3463_v41  ;;  %v4118_v42 = vand.u32 2147483647, %v3503_v12  ;;  %2391 = vrcp.f32 %v1249_v27  ;;  %v1226_v43 = vadd.f32 %v4107_v57, %v4108_v2  ;;  %v1036_v60 = vld [vmem:[%s4100_s2 + $0x98] sm:$0xff]  ;;  %v1127_v12 = vld [vmem:[%s3194_s20 + $0x70] sm:$0xff] }
 0x21b   : > { %v1060_v41 = vld [vmem:[%s4100_s2 + $0x158] sm:$0xff]  ;;  %2393 = vpow2.f32 %v1499_v54  ;;  %v1011_v45 = vmul.f32 0.00390625, %v3487_v38  ;;  %v988_v29 = vmul.f32 0.00390625, %v3505_v21  ;;  %v1012_v39 = vmul.f32 0.00390625, %v3507_v61 }
 0x21c   : > { %v1286_v16 = vmul.f32 %v2376_v4, %v4117_v49  ;;  %v1343_v6 = vmul.f32 %v2376_v4, %v4118_v42  ;;  %v3644_v22 = vpop.eup %2377  ;;  %2395 = vpow2.f32 %v1571_v48  ;;  %v1250_v4 = vadd.f32 1e-08, %v1226_v43  ;;  %v1037_v48 = vld [vmem:[%s4100_s2 + $0xa0] sm:$0xff] }
 0x21d   : > { %v3646_v49 = vpop.eup %2379  ;;  %v3648_v42 = vadd.f32 %v1059_v8, %v1011_v45  ;;  %2397 = vrcp.f32 %v1595_v59  ;;  %v3650_v54 = vadd.f32 %v1036_v60, %v988_v29  ;;  %v3652_v57 = vadd.f32 %v1060_v41, %v1012_v39 }
 0x21e   : > { %v1319_v11 = vmul.f32 5.0, %v1286_v16  ;;  %v1367_v27 = vmul.f32 5.0, %v1343_v6  ;;  %v3654_v38 = vpop.eup %2381  ;;  %2399 = vrcp.f32 %v1250_v4  ;;  %v1596_v61 = vadd.f32 %v3385_v15, %v3383_v35 }
 0x21f   : > { %v3661_v16 = vpop.eup %2383  ;;  %v4111_v59 = vand.u32 2147483647, %v3648_v42  ;;  %v4110_v6 = vand.u32 2147483647, %v3650_v54  ;;  %v4109_v43 = vand.u32 2147483647, %v3652_v57  ;;  %v3668_v8 = vadd.f32 %v3415_v23, %v3401_v25 }
 0x220   : > { %v1391_v21 = vadd.f32 %v1319_v11, %v1127_v12  ;;  %v1415_v2 = vadd.f32 %v1367_v27, %v1151_v24  ;;  %4119 = vst [vmem:[#allocation5_spill] sm:$0xff] %v3661_v16  ;;  %v2386_v15 = vpop.eup %2385  ;;  %2401 = vrcp.f32 %v1596_v61  ;;  %v989_v41 = vmul.f32 0.00390625, %v3529_v34  ;;  %v1061_v34 = vld [vmem:[%s4100_s2 + $0x160] sm:$0xff]  ;;  %v1128_v11 = vld [vmem:[%s3194_s20 + $0x78] sm:$0xff] }
 0x221   : > { %v1013_v12 = vmul.f32 0.00390625, %v3531_v47  ;;  %v2388_v24 = vpop.eup %2387  ;;  %v1288_v45 = vmul.f32 %v2386_v15, %v1176_v33  ;;  %v1344_v29 = vmul.f32 %v2386_v15, %v1200_v13  ;;  %v1227_v23 = vadd.f32 %v4111_v59, %v4112_v40  ;;  %v1129_v16 = vld [vmem:[%s3194_s20 + $0x80] sm:$0xff] }
 0x222   : > { %v1439_v60 = vmax.f32 %v1391_v21, %v1415_v2  ;;  %v1228_v39 = vadd.f32 %v4109_v43, %v4110_v6  ;;  %v2390_v47 = vpop.eup %2389  ;;  %v1618_v13 = vmul.f32 %v2388_v24, %v3298_v50  ;;  %v3690_v27 = vadd.f32 %v1037_v48, %v989_v41  ;;  %v1153_v50 = vld [vmem:[%s3200_s29 + $0x80] sm:$0xff] }
 0x223   : > { %v1320_v4 = vmul.f32 5.0, %v1288_v45  ;;  %v1368_v61 = vmul.f32 5.0, %v1344_v29  ;;  %v1620_v15 = vmul.f32 %v2390_v47, %v3320_v5  ;;  %v1251_v43 = vadd.f32 1e-08, %v1227_v23 }
 0x224   : > { %v1463_v58 = vsub.f32 %v1391_v21, %v1439_v60  ;;  %v1535_v33 = vsub.f32 %v1415_v2, %v1439_v60  ;;  %v2392_v6 = vpop.eup %2391  ;;  %v1665_v10 = vmul.f32 1.1, %v1618_v13  ;;  %v3693_v28 = vadd.f32 %v1061_v34, %v1013_v12 }
 0x225   : > { %v3695_v2 = vpop.eup %2393  ;;  %v1392_v21 = vadd.f32 %v1320_v4, %v1128_v11  ;;  %v1416_v60 = vadd.f32 %v1368_v61, %v1152_v1  ;;  %v4120_v48 = vand.u32 2147483647, %v3574_v53  ;;  %v4121_v24 = vand.u32 2147483647, %v3576_v51 }
 0x226   : > { %v1501_v59 = vmul.f32 1.442695, %v1463_v58  ;;  %v1573_v40 = vmul.f32 1.442695, %v1535_v33  ;;  %v3703_v45 = vpop.eup %2395  ;;  %v2167_v29 = vadd.f32 -0.1, %v1665_v10 }
 0x227   : > { %v1290_v41 = vmul.f32 %v2392_v6, %v4120_v48  ;;  %v1345_v5 = vmul.f32 %v2392_v6, %v4121_v24  ;;  %v1666_v23 = vmul.f32 1.1, %v1620_v15  ;;  %v1252_v12 = vadd.f32 1e-08, %v1228_v39  ;;  %v2398_v34 = vpop.eup %2397 }
 0x228   : > { %2403 = vpow2.f32 %v1501_v59  ;;  %v1440_v47 = vmax.f32 %v1392_v21, %v1416_v60  ;;  %v2400_v53 = vpop.eup %2399  ;;  %v1713_v51 = vmax.f32 %v2167_v29, 0.0  ;;  %v1622_v10 = vmul.f32 %v2398_v34, %v3355_v0 }
 0x229   : > { %2405 = vpow2.f32 %v1573_v40  ;;  %v1321_v58 = vmul.f32 5.0, %v1290_v41  ;;  %v1369_v33 = vmul.f32 5.0, %v1345_v5  ;;  %v2168_v6 = vadd.f32 -0.1, %v1666_v23 }
 0x22a   : > { %2407 = vrcp.f32 %v1251_v43  ;;  %v1464_v59 = vsub.f32 %v1392_v21, %v1440_v47  ;;  %v1536_v39 = vsub.f32 %v1416_v60, %v1440_v47  ;;  %v2402_v1 = vpop.eup %2401  ;;  %1764 = vperm.xlu0 %2301, %v1713_v51   ;;  %1738 = vst.msk [vmem:[%s3709_s10] sm:$0xff] %vm1737_vm1, %v1713_v51  ;;  %v4122_v13 = vand.u32 2147483647, %v3606_v63  ;;  %v1130_v21 = vld [vmem:[%s3194_s20 + $0x88] sm:$0xff] }
 0x22b   : > { %v1393_v40 = vadd.f32 %v1321_v58, %v1129_v16  ;;  %v1417_v11 = vadd.f32 %v1369_v33, %v1153_v50  ;;  %v4123_v61 = vand.u32 2147483647, %v3608_v26  ;;  %v1714_v43 = vmax.f32 %v2168_v6, 0.0  ;;  %v1154_v60 = vld [vmem:[%s3200_s29 + $0x88] sm:$0xff] }
 0x22c   : > { %v1292_v4 = vmul.f32 %v2400_v53, %v4122_v13  ;;  %v1667_v48 = vmul.f32 1.1, %v1622_v10  ;;  %v1503_v41 = vmul.f32 1.442695, %v1464_v59  ;;  %v1575_v0 = vmul.f32 1.442695, %v1536_v39 }
 0x22d   : > { %v1346_v15 = vmul.f32 %v2400_v53, %v4123_v61  ;;  %v1441_v24 = vmax.f32 %v1393_v40, %v1417_v11  ;;  %2409 = vrcp.f32 %v1252_v12  ;;  %1769 = vperm.xlu1 %2302, %v1714_v43   ;;  %1739 = vst.msk [vmem:[%s3709_s10 + $0x8] sm:$0xff] %vm1737_vm1, %v1714_v43  ;;  %v1624_v63 = vmul.f32 %v2402_v1, %v3383_v35  ;;  %v1038_v59 = vld [vmem:[%s4100_s2 + $0xa8] sm:$0xff]  ;;  %v1155_v43 = vld [vmem:[%s3200_s29 + $0x90] sm:$0xff] }
 0x22e   : > { %v1322_v16 = vmul.f32 5.0, %v1292_v4  ;;  %v2169_v5 = vadd.f32 -0.1, %v1667_v48  ;;  %2411 = vpow2.f32 %v1503_v41  ;;  %v1181_v23 = vand.u32 2147483647, %v3690_v27 }
 0x22f   : > { %v1370_v50 = vmul.f32 5.0, %v1346_v15  ;;  %v1465_v26 = vsub.f32 %v1393_v40, %v1441_v24  ;;  %v1537_v29 = vsub.f32 %v1417_v11, %v1441_v24  ;;  %2413 = vpow2.f32 %v1575_v0  ;;  %v1062_v11 = vld [vmem:[%s4100_s2 + $0x168] sm:$0xff]  ;;  %v1131_v15 = vld [vmem:[%s3194_s20 + $0x90] sm:$0xff] }
 0x230   : > { %v1394_v34 = vadd.f32 %v1322_v16, %v1130_v21  ;;  %v1715_v58 = vmax.f32 %v2169_v5, 0.0  ;;  %v1668_v53 = vmul.f32 1.1, %v1624_v63  ;;  %2415 = vrcp.f32 %v3668_v8  ;;  %v1039_v21 = vld [vmem:[%s4100_s2 + $0xb0] sm:$0xff] }
 0x231   : > { %v1418_v47 = vadd.f32 %v1370_v50, %v1154_v60  ;;  %v1505_v33 = vmul.f32 1.442695, %v1465_v26  ;;  %v1577_v12 = vmul.f32 1.442695, %v1537_v29  ;;  %v1205_v35 = vand.u32 2147483647, %v3693_v28 }
 0x232   : > { %v3725_v51 = vpop.eup %2403  ;;  %1774 = vperm.xlu1 %2302, %v1715_v58   ;;  %1740 = vst.msk [vmem:[%s3709_s10 + $0x10] sm:$0xff] %vm1737_vm1, %v1715_v58  ;;  %v990_v10 = vmul.f32 0.00390625, %v3543_v30  ;;  %v1014_v39 = vmul.f32 0.00390625, %v3545_v14  ;;  %v2170_v8 = vadd.f32 -0.1, %v1668_v53  ;;  %v1598_v1 = vadd.f32 %v3455_v7, %v3452_v18 }
 0x233   : > { %v1442_v6 = vmax.f32 %v1394_v34, %v1418_v47  ;;  %v3735_v40 = vpop.eup %2405  ;;  %2417 = vpow2.f32 %v1505_v33  ;;  %v991_v13 = vmul.f32 0.00390625, %v3570_v46  ;;  %v1229_v14 = vadd.f32 %v1205_v35, %v1181_v23 }
 0x234   : > { %v2408_v30 = vpop.eup %2407  ;;  %2419 = vpow2.f32 %v1577_v12  ;;  %v4124_v48 = vand.u32 2147483647, %v3613_v44  ;;  %v4125_v0 = vand.u32 2147483647, %v3648_v42  ;;  %v1716_v24 = vmax.f32 %v2170_v8, 0.0 }
 0x235   : > { %v1466_v4 = vsub.f32 %v1394_v34, %v1442_v6  ;;  %v1538_v61 = vsub.f32 %v1418_v47, %v1442_v6  ;;  %v3753_v46 = vadd.f32 %v1038_v59, %v990_v10  ;;  %v1253_v50 = vadd.f32 1e-08, %v1229_v14  ;;  %v1132_v10 = vld [vmem:[%s3194_s20 + $0x98] sm:$0xff] }
 0x236   : > { %v1294_v41 = vmul.f32 %v2408_v30, %v4124_v48  ;;  %v1347_v7 = vmul.f32 %v2408_v30, %v4125_v0  ;;  %v3758_v5 = vadd.f32 %v1062_v11, %v1014_v39  ;;  %1779 = vperm.xlu1 %2302, %v1716_v24   ;;  %1741 = vst.msk [vmem:[%s3709_s10 + $0x18] sm:$0xff] %vm1737_vm1, %v1716_v24  ;;  %2421 = vrcp.f32 %v1598_v1  ;;  %v1156_v59 = vld [vmem:[%s3200_s29 + $0x98] sm:$0xff] }
 0x237   : > { %v1507_v60 = vmul.f32 1.442695, %v1466_v4  ;;  %v1579_v16 = vmul.f32 1.442695, %v1538_v61  ;;  %v2410_v63 = vpop.eup %2409  ;;  %v1182_v42 = vand.u32 2147483647, %v3753_v46  ;;  %v3772_v39 = vadd.f32 %v1039_v21, %v991_v13 }
 0x238   : > { %v1323_v44 = vmul.f32 5.0, %v1294_v41  ;;  %v1371_v26 = vmul.f32 5.0, %v1347_v7  ;;  %v4126_v29 = vand.u32 2147483647, %v3650_v54  ;;  %v4127_v47 = vand.u32 2147483647, %v3652_v57  ;;  %v3768_v12 = vpop.eup %2411 }
 0x239   : > { %2423 = vpow2.f32 %v1507_v60  ;;  %v1206_v33 = vand.u32 2147483647, %v3758_v5  ;;  %v3774_v8 = vpop.eup %2413  ;;  %v1063_v54 = vld [vmem:[%s4100_s2 + $0x170] sm:$0xff]  ;;  %v1183_v61 = vand.u32 2147483647, %v3772_v39  ;;  %v1015_v13 = vmul.f32 0.00390625, %v3572_v17 }
 0x23a   : > { %v1296_v34 = vmul.f32 %v2410_v63, %v4126_v29  ;;  %v1348_v58 = vmul.f32 %v2410_v63, %v4127_v47  ;;  %2425 = vpow2.f32 %v1579_v16  ;;  %v1395_v53 = vadd.f32 %v1323_v44, %v1131_v15  ;;  %v2416_v30 = vpop.eup %2415  ;;  %v1040_v60 = vld [vmem:[%s4100_s2 + $0xb8] sm:$0xff] }
 0x23b   : > { %v1419_v6 = vadd.f32 %v1371_v26, %v1155_v43  ;;  %2427 = vrcp.f32 %v1253_v50  ;;  %v1230_v57 = vadd.f32 %v1206_v33, %v1182_v42  ;;  %v1599_v14 = vadd.f32 %v3492_v31, %v3489_v37 }
 0x23c   : > { %v1324_v11 = vmul.f32 5.0, %v1296_v34  ;;  %v1372_v1 = vmul.f32 5.0, %v1348_v58  ;;  %v1626_v48 = vmul.f32 %v2416_v30, %v3401_v25  ;;  %v3790_v21 = vadd.f32 %v1063_v54, %v1015_v13 }
 0x23d   : > { %v1443_v4 = vmax.f32 %v1395_v53, %v1419_v6  ;;  %v1254_v41 = vadd.f32 1e-08, %v1230_v57  ;;  %v3788_v0 = vpop.eup %2417  ;;  %2429 = vrcp.f32 %v1599_v14  ;;  %v992_v50 = vmul.f32 0.00390625, %v3588_v62 }
 0x23e   : > { %v1396_v15 = vadd.f32 %v1324_v11, %v1132_v10  ;;  %v1420_v43 = vadd.f32 %v1372_v1, %v1156_v59  ;;  %v3795_v17 = vpop.eup %2419  ;;  %v1669_v31 = vmul.f32 1.1, %v1626_v48  ;;  %v1207_v44 = vand.u32 2147483647, %v3790_v21 }
 0x23f   : > { %v1467_v7 = vsub.f32 %v1395_v53, %v1443_v4  ;;  %v1539_v24 = vsub.f32 %v1419_v6, %v1443_v4  ;;  %2431 = vrcp.f32 %v1254_v41  ;;  %v1600_v26 = vadd.f32 %v3539_v56, %v3535_v20  ;;  %v1064_v53 = vld [vmem:[%s4100_s2 + $0x178] sm:$0xff] }
 0x240   : > { %v1444_v16 = vmax.f32 %v1396_v15, %v1420_v43  ;;  %v2171_v47 = vadd.f32 -0.1, %v1669_v31  ;;  %v3801_v58 = vadd.f32 %v1040_v60, %v992_v50  ;;  %v2422_v6 = vpop.eup %2421  ;;  %v1231_v62 = vadd.f32 %v1207_v44, %v1183_v61  ;;  %v4128_v60 = vld [vmem:[#allocation5_spill] sm:$0xff] }
 0x241   : > { %v1509_v25 = vmul.f32 1.442695, %v1467_v7  ;;  %v1581_v63 = vmul.f32 1.442695, %v1539_v24  ;;  %v1016_v10 = vmul.f32 0.00390625, %v3590_v36  ;;  %v1601_v56 = vadd.f32 %v3555_v52, %v3550_v19  ;;  %v1133_v7 = vld [vmem:[%s3194_s20 + $0xa0] sm:$0xff] }
 0x242   : > { %v1468_v29 = vsub.f32 %v1396_v15, %v1444_v16  ;;  %v1540_v34 = vsub.f32 %v1420_v43, %v1444_v16  ;;  %v1717_v57 = vmax.f32 %v2171_v47, 0.0  ;;  %v1628_v30 = vmul.f32 %v2422_v6, %v3452_v18  ;;  %v1157_v24 = vld [vmem:[%s3200_s29 + $0xa0] sm:$0xff] }
 0x243   : > { %2433 = vpow2.f32 %v1509_v25  ;;  %v3813_v59 = vpop.eup %2423  ;;  %v1255_v4 = vadd.f32 1e-08, %v1231_v62  ;;  %v1184_v13 = vand.u32 2147483647, %v3801_v58  ;;  %v3817_v14 = vadd.f32 %v1064_v53, %v1016_v10 }
 0x244   : > { %2435 = vpow2.f32 %v1581_v63  ;;  %v1511_v11 = vmul.f32 1.442695, %v1468_v29  ;;  %v1583_v1 = vmul.f32 1.442695, %v1540_v34  ;;  %v2426_v54 = vpop.eup %2425  ;;  %1784 = vperm.xlu1 %2302, %v1717_v57   ;;  %1742 = vst.msk [vmem:[%s3709_s10 + $0x20] sm:$0xff] %vm1737_vm1, %v1717_v57  ;;  %v1602_v52 = vadd.f32 %v3600_v32, %v3595_v9  ;;  %v1134_v29 = vld [vmem:[%s3194_s20 + $0xa8] sm:$0xff] }
 0x245   : > { %v2428_v36 = vpop.eup %2427  ;;  %v1603_v15 = vadd.f32 %v3615_v3, %v3610_v55  ;;  %v1604_v18 = vadd.f32 %v3646_v49, %v3644_v22  ;;  %v1670_v41 = vmul.f32 1.1, %v1628_v30  ;;  %v1208_v32 = vand.u32 2147483647, %v3817_v14 }
 0x246   : > { %2437 = vpow2.f32 %v1511_v11  ;;  %v1298_v43 = vmul.f32 %v2428_v36, %v1181_v23  ;;  %v1349_v48 = vmul.f32 %v2428_v36, %v1205_v35  ;;  %v1605_v3 = vadd.f32 %v4128_v60, %v3654_v38 }
 0x247   : > { %2439 = vpow2.f32 %v1583_v1  ;;  %v1606_v49 = vadd.f32 %v3703_v45, %v3695_v2  ;;  %v2430_v16 = vpop.eup %2429  ;;  %v2172_v31 = vadd.f32 -0.1, %v1670_v41  ;;  %v1232_v50 = vadd.f32 %v1208_v32, %v1184_v13 }
 0x248   : > { %2441 = vrcp.f32 %v1255_v4  ;;  %v1325_v27 = vmul.f32 5.0, %v1298_v43  ;;  %v1373_v23 = vmul.f32 5.0, %v1349_v48  ;;  %v1630_v35 = vmul.f32 %v2430_v16, %v3489_v37  ;;  %v1158_v37 = vld [vmem:[%s3200_s29 + $0xa8] sm:$0xff] }
 0x249   : > { %2443 = vrcp.f32 %v1600_v26  ;;  %v2432_v28 = vpop.eup %2431  ;;  %v1607_v25 = vadd.f32 %v3735_v40, %v3725_v51  ;;  %v1718_v47 = vmax.f32 %v2172_v31, 0.0  ;;  %v1256_v6 = vadd.f32 1e-08, %v1232_v50 }
 0x24a   : > { %2445 = vrcp.f32 %v1601_v56  ;;  %v1397_v63 = vadd.f32 %v1325_v27, %v1133_v7  ;;  %v1421_v45 = vadd.f32 %v1373_v23, %v1157_v24  ;;  %v1300_v34 = vmul.f32 %v2432_v28, %v1182_v42  ;;  %v1135_v27 = vld [vmem:[%s3194_s20 + $0xb0] sm:$0xff] }
 0x24b   : > { %v1350_v26 = vmul.f32 %v2432_v28, %v1206_v33  ;;  %v1671_v53 = vmul.f32 1.1, %v1630_v35  ;;  %2447 = vrcp.f32 %v1602_v52  ;;  %1789 = vperm.xlu1 %2302, %v1718_v47   ;;  %1743 = vst.msk [vmem:[%s3709_s10 + $0x28] sm:$0xff] %vm1737_vm1, %v1718_v47  ;;  %v1608_v5 = vadd.f32 %v3774_v8, %v3768_v12  ;;  %v1159_v28 = vld [vmem:[%s3200_s29 + $0xb0] sm:$0xff] }
 0x24c   : > { %v1445_v10 = vmax.f32 %v1397_v63, %v1421_v45  ;;  %v1326_v56 = vmul.f32 5.0, %v1300_v34  ;;  %2449 = vrcp.f32 %v1603_v15  ;;  %v3859_v42 = vadd.f32 %v3795_v17, %v3788_v0 }
 0x24d   : > { %v3851_v62 = vpop.eup %2433  ;;  %v1374_v40 = vmul.f32 5.0, %v1350_v26  ;;  %v2173_v46 = vadd.f32 -0.1, %v1671_v53  ;;  %2451 = vrcp.f32 %v1256_v6  ;;  %v3864_v52 = vadd.f32 %v2426_v54, %v3813_v59 }
 0x24e   : > { %v2436_v11 = vpop.eup %2435  ;;  %v1469_v33 = vsub.f32 %v1397_v63, %v1445_v10  ;;  %v1541_v1 = vsub.f32 %v1421_v45, %v1445_v10  ;;  %v1398_v57 = vadd.f32 %v1326_v56, %v1134_v29  ;;  %2453 = vrcp.f32 %v1604_v18  ;;  %v1136_v56 = vld [vmem:[%s3194_s20 + $0xb8] sm:$0xff]  ;;  %s273_s20 = sand.u32 1, %s2597_s22  }
 0x24f   : > { %v1422_v30 = vadd.f32 %v1374_v40, %v1158_v37  ;;  %v1719_v36 = vmax.f32 %v2173_v46, 0.0  ;;  %v3867_v15 = vadd.f32 %v2436_v11, %v3851_v62  ;;  %2455 = vrcp.f32 %v1605_v3  ;;  %v1160_v40 = vld [vmem:[%s3200_s29 + $0xb8] sm:$0xff]  ;;  %s2254_s29 = smul.u32 384, %s273_s20 }
 0x250   : > { %v3861_v4 = vpop.eup %2437  ;;  %v1513_v43 = vmul.f32 1.442695, %v1469_v33  ;;  %v1585_v17 = vmul.f32 1.442695, %v1541_v1  ;;  %2457 = vrcp.f32 %v1606_v49 }
 0x251   : > { %v2440_v8 = vpop.eup %2439  ;;  %v1446_v48 = vmax.f32 %v1398_v57, %v1422_v30  ;;  %1794 = vperm.xlu1 %2302, %v1719_v36   ;;  %1744 = vst.msk [vmem:[%s3709_s10 + $0x30] sm:$0xff] %vm1737_vm1, %v1719_v36  ;;  %s3950_s11 = scalar_lea.vmem [#allocation2], %s2254_s29 }
 0x252   : > { %v2442_v41 = vpop.eup %2441  ;;  %v3872_v18 = vadd.f32 %v2440_v8, %v3861_v4  ;;  %2459 = vpow2.f32 %v1513_v43  ;;  %s1997_s12 = sshll.u32 %s3950_s11, 4  ;;  %s4051_s12 = int_to_ptr.vmem [resolvable:$true] %s1997_s12 }
 0x253   : > { %v2444_v54 = vpop.eup %2443  ;;  %v1470_v7 = vsub.f32 %v1398_v57, %v1446_v48  ;;  %v1542_v24 = vsub.f32 %v1422_v30, %v1446_v48  ;;  %v1302_v60 = vmul.f32 %v2442_v41, %v1183_v61  ;;  %2461 = vpow2.f32 %v1585_v17  ;;  %s2543_s18 = scalar_lea.vmem %s4051_s12, 6144  ;;  %p2550_p0 = scmp.lt.s32.totalorder %s4051_s12, %s2548_s19 }
 0x254   : > { %v2446_v16 = vpop.eup %2445  ;;  %v1351_v3 = vmul.f32 %v2442_v41, %v1207_v44  ;;  %v1632_v23 = vmul.f32 %v2444_v54, %v3535_v20  ;;  %2463 = vrcp.f32 %v1607_v25  ;;  %p2544_p11 = scmp.ne.s32.totalorder %s4051_s12, %s2543_s18 }
 0x255   : > { %v1515_v31 = vmul.f32 1.442695, %v1470_v7  ;;  %v1587_v49 = vmul.f32 1.442695, %v1542_v24  ;;  %v1327_v35 = vmul.f32 5.0, %v1302_v60  ;;  %v1634_v50 = vmul.f32 %v2446_v16, %v3550_v19  ;;  %v2448_v63 = vpop.eup %2447 }
 0x256   : > { %v1375_v45 = vmul.f32 5.0, %v1351_v3  ;;  %v1672_v29 = vmul.f32 1.1, %v1632_v23  ;;  %v2450_v39 = vpop.eup %2449  ;;  %v1636_v21 = vmul.f32 %v2448_v63, %v3595_v9  ;;  %p2545_p12 = pnand %p2544_p11, %p2685_p5 }
 0x257   : > { %2465 = vpow2.f32 %v1515_v31  ;;  %v1399_v61 = vadd.f32 %v1327_v35, %v1135_v27  ;;  %v1673_v34 = vmul.f32 1.1, %v1634_v50  ;;  %v2452_v44 = vpop.eup %2451  ;;  %v1638_v37 = vmul.f32 %v2450_v39, %v3610_v55 }
 0x258   : > { %2467 = vpow2.f32 %v1587_v49  ;;  %v1423_v20 = vadd.f32 %v1375_v45, %v1159_v28  ;;  %v2174_v26 = vadd.f32 -0.1, %v1672_v29  ;;  %v1304_v19 = vmul.f32 %v2452_v44, %v1184_v13  ;;  %v2454_v6 = vpop.eup %2453  ;;  %p2546_p13 = pneg %p2545_p12 }
 0x259   : > { %v1352_v25 = vmul.f32 %v2452_v44, %v1208_v32  ;;  %v2175_v47 = vadd.f32 -0.1, %v1673_v34  ;;  %v1674_v53 = vmul.f32 1.1, %v1636_v21  ;;  %v1675_v11 = vmul.f32 1.1, %v1638_v37  ;;  %v2456_v46 = vpop.eup %2455 }
 0x25a   : > { %v1447_v10 = vmax.f32 %v1399_v61, %v1423_v20  ;;  %v1720_v9 = vmax.f32 %v2174_v26, 0.0  ;;  %2469 = vrcp.f32 %v1608_v5  ;;  %v1328_v33 = vmul.f32 5.0, %v1304_v19  ;;  %v2458_v13 = vpop.eup %2457 }
 0x25b   : > { %v1376_v55 = vmul.f32 5.0, %v1352_v25  ;;  %v1721_v1 = vmax.f32 %v2175_v47, 0.0  ;;  %v2176_v58 = vadd.f32 -0.1, %v1674_v53  ;;  %v2177_v32 = vadd.f32 -0.1, %v1675_v11 }
 0x25c   : > { %v1471_v57 = vsub.f32 %v1399_v61, %v1447_v10  ;;  %v1543_v14 = vsub.f32 %v1423_v20, %v1447_v10  ;;  %1799 = vperm.xlu1 %2302, %v1720_v9   ;;  %1745 = vst.msk [vmem:[%s3709_s10 + $0x38] sm:$0xff] %vm1737_vm1, %v1720_v9  ;;  %v1640_v30 = vmul.f32 %v2454_v6, %v3644_v22  ;;  %v3893_v36 = vpop.eup %2459  ;;  %2471 = vrcp.f32 %v3859_v42 }
 0x25d   : > { %v1400_v8 = vadd.f32 %v1328_v33, %v1136_v56  ;;  %v1424_v5 = vadd.f32 %v1376_v55, %v1160_v40  ;;  %1746 = vst.msk [vmem:[%s3709_s10 + $0x40] sm:$0xff] %vm1737_vm1, %v1721_v1  ;;  %v1722_v43 = vmax.f32 %v2176_v58, 0.0  ;;  %v1642_v17 = vmul.f32 %v2456_v46, %v3654_v38  ;;  %v2462_v48 = vpop.eup %2461 }
 0x25e   : > { %v1517_v41 = vmul.f32 1.442695, %v1471_v57  ;;  %v1589_v54 = vmul.f32 1.442695, %v1543_v14  ;;  %v1723_v7 = vmax.f32 %v2177_v32, 0.0  ;;  %v1644_v24 = vmul.f32 %v2458_v13, %v3695_v2  ;;  %v2464_v27 = vpop.eup %2463 }
 0x25f   : > { %v1448_v60 = vmax.f32 %v1400_v8, %v1424_v5  ;;  %1809 = vperm.xlu0 %2301, %v1722_v43   ;;  %1747 = vst.msk [vmem:[%s3709_s10 + $0x48] sm:$0xff] %vm1737_vm1, %v1722_v43  ;;  %v1676_v22 = vmul.f32 1.1, %v1640_v30  ;;  %v1677_v16 = vmul.f32 1.1, %v1642_v17  ;;  %v1613_v3 = vadd.f32 %v2462_v48, %v3893_v36 }
 0x260   : > { %2473 = vpow2.f32 %v1517_v41  ;;  %1804 = vperm.xlu1 %2302, %v1721_v1   ;;  %1748 = vst.msk [vmem:[%s3709_s10 + $0x50] sm:$0xff] %vm1737_vm1, %v1723_v7  ;;  %v1678_v38 = vmul.f32 1.1, %v1644_v24  ;;  %v1646_v42 = vmul.f32 %v2464_v27, %v3725_v51 }
 0x261   : > { %v3905_v23 = vpop.eup %2465  ;;  %2475 = vpow2.f32 %v1589_v54  ;;  %v1472_v2 = vsub.f32 %v1400_v8, %v1448_v60  ;;  %v1544_v31 = vsub.f32 %v1424_v5, %v1448_v60  ;;  %v2178_v49 = vadd.f32 -0.1, %v1676_v22 }
 0x262   : > { %v2468_v28 = vpop.eup %2467  ;;  %v2179_v35 = vadd.f32 -0.1, %v1677_v16  ;;  %v2180_v50 = vadd.f32 -0.1, %v1678_v38  ;;  %2477 = vrcp.f32 %v3864_v52  ;;  %v1679_v21 = vmul.f32 1.1, %v1646_v42 }
 0x263   : > { %v1519_v63 = vmul.f32 1.442695, %v1472_v2  ;;  %v1591_v45 = vmul.f32 1.442695, %v1544_v31  ;;  %v1724_v29 = vmax.f32 %v2178_v49, 0.0  ;;  %2479 = vrcp.f32 %v3867_v15  ;;  %v2496_v42 = vld [vmem:[%s2703_s13 + $0x8] sm:$0xff] }
 0x264   : > { %v2470_v39 = vpop.eup %2469  ;;  %1814 = vperm.xlu1 %2302, %v1723_v7   ;;  %v1725_v61 = vmax.f32 %v2179_v35, 0.0  ;;  %v1726_v34 = vmax.f32 %v2180_v50, 0.0  ;;  %2481 = vrcp.f32 %v3872_v18  ;;  %v1614_v52 = vadd.f32 %v2468_v28, %v3905_v23  ;;  %v2495_v35 = vld [vmem:[%s2703_s13] sm:$0xff] }
 0x265   : > { %2483 = vpow2.f32 %v1519_v63  ;;  %1819 = vperm.xlu0 %2301, %v1724_v29   ;;  %1749 = vst.msk [vmem:[%s3709_s10 + $0x58] sm:$0xff] %vm1737_vm1, %v1724_v29  ;;  %v1648_v51 = vmul.f32 %v2470_v39, %v3768_v12  ;;  %v2181_v15 = vadd.f32 -0.1, %v1679_v21  ;;  %v2497_v29 = vld [vmem:[%s2703_s13 + $0x10] sm:$0xff] }
 0x266   : > { %2485 = vpow2.f32 %v1591_v45  ;;  %1750 = vst.msk [vmem:[%s3709_s10 + $0x60] sm:$0xff] %vm1737_vm1, %v1725_v61  ;;  %1751 = vst.msk [vmem:[%s3709_s10 + $0x68] sm:$0xff] %vm1737_vm1, %v1726_v34  ;;  %v2472_v18 = vpop.eup %2471 }
 0x267   : > { %v1680_v44 = vmul.f32 1.1, %v1648_v51  ;;  %2487 = vrcp.f32 %v1613_v3  ;;  %v1727_v20 = vmax.f32 %v2181_v15, 0.0  ;;  %v1650_v12 = vmul.f32 %v2472_v18, %v3788_v0  ;;  %v2499_v51 = vld [vmem:[%s2703_s13 + $0x20] sm:$0xff]  ;;  %v2500_v15 = vld [vmem:[%s2703_s13 + $0x28] sm:$0xff]  ;;  %v2501_v18 = vld [vmem:[%s2703_s13 + $0x30] sm:$0xff] }
 0x268   : > { %1824 = vperm.xlu1 %2302, %v1725_v61   ;;  %2489 = vrcp.f32 %v1614_v52  ;;  %v2498_v61 = vld [vmem:[%s2703_s13 + $0x18] sm:$0xff] }
 0x269   : > { %1829 = vperm.xlu0 %2301, %v1726_v34   ;;  %v2182_v26 = vadd.f32 -0.1, %v1680_v44  ;;  %1752 = vst.msk [vmem:[%s3709_s10 + $0x70] sm:$0xff] %vm1737_vm1, %v1727_v20  ;;  %v1681_v53 = vmul.f32 1.1, %v1650_v12 }
 0x26a   : > { %v2474_v37 = vpop.eup %2473 }
 0x26b   : > { %v2476_v19 = vpop.eup %2475  ;;  %v1728_v25 = vmax.f32 %v2182_v26, 0.0  ;;  %v2183_v9 = vadd.f32 -0.1, %v1681_v53  ;;  %v2504_v53 = vld [vmem:[%s2703_s13 + $0x48] sm:$0xff] }
 0x26c   : > { %v2478_v47 = vpop.eup %2477  ;;  %1834 = vperm.xlu1 %2302, %v1727_v20   ;;  %v1615_v6 = vadd.f32 %v2476_v19, %v2474_v37 }
 0x26d   : > { %v2480_v10 = vpop.eup %2479  ;;  %1839 = vperm.xlu0 %2301, %v1728_v25   ;;  %1753 = vst.msk [vmem:[%s3709_s10 + $0x78] sm:$0xff] %vm1737_vm1, %v1728_v25  ;;  %v1652_v56 = vmul.f32 %v2478_v47, %v3813_v59  ;;  %v1729_v1 = vmax.f32 %v2183_v9, 0.0  ;;  %v2503_v25 = vld [vmem:[%s2703_s13 + $0x40] sm:$0xff]  ;;  %v2506_v9 = vld [vmem:[%s2703_s13 + $0x58] sm:$0xff] }
 0x26e   : > { %v2482_v40 = vpop.eup %2481  ;;  %v1654_v11 = vmul.f32 %v2480_v10, %v3851_v62  ;;  %2491 = vrcp.f32 %v1615_v6 }
 0x26f   : > { %v2484_v46 = vpop.eup %2483  ;;  %v1682_v0 = vmul.f32 1.1, %v1652_v56  ;;  %v1656_v33 = vmul.f32 %v2482_v40, %v3861_v4  ;;  %1754 = vst.msk [vmem:[%s3709_s10 + $0x80] sm:$0xff] %vm1737_vm1, %v1729_v1  ;;  %v2505_v56 = vld [vmem:[%s2703_s13 + $0x50] sm:$0xff] }
 0x270   : > { %v2486_v55 = vpop.eup %2485  ;;  %v1683_v58 = vmul.f32 1.1, %v1654_v11  ;;  %1844 = vperm.xlu1 %2302, %v1729_v1  }
 0x271   : > { %v2488_v13 = vpop.eup %2487  ;;  %v2184_v57 = vadd.f32 -0.1, %v1682_v0  ;;  %v1684_v14 = vmul.f32 1.1, %v1656_v33  ;;  %v1616_v32 = vadd.f32 %v2486_v55, %v2484_v46  ;;  %v2507_v0 = vld [vmem:[%s2703_s13 + $0x60] sm:$0xff]  ;;  %v2508_v55 = vld [vmem:[%s2703_s13 + $0x68] sm:$0xff] }
 0x272   : > { %v2490_v30 = vpop.eup %2489  ;;  %v2185_v59 = vadd.f32 -0.1, %v1683_v58  ;;  %v1658_v62 = vmul.f32 %v2488_v13, %v3893_v36  ;;  %v2509_v13 = vld [vmem:[%s2703_s13 + $0x70] sm:$0xff] }
 0x273   : > { %v1730_v8 = vmax.f32 %v2184_v57, 0.0  ;;  %v2186_v5 = vadd.f32 -0.1, %v1684_v14  ;;  %v1660_v4 = vmul.f32 %v2490_v30, %v3905_v23  ;;  %2493 = vrcp.f32 %v1616_v32  ;;  %v2510_v14 = vld [vmem:[%s2703_s13 + $0x78] sm:$0xff] }
 0x274   : > { %v1731_v43 = vmax.f32 %v2185_v59, 0.0  ;;  %v1685_v17 = vmul.f32 1.1, %v1658_v62  ;;  %v2511_v62 = vld [vmem:[%s2703_s13 + $0x90] sm:$0xff] }
 0x275   : > { %1849 = vperm.xlu0 %2301, %v1730_v8   ;;  %1755 = vst.msk [vmem:[%s3709_s10 + $0x88] sm:$0xff] %vm1737_vm1, %v1730_v8  ;;  %v1732_v48 = vmax.f32 %v2186_v5, 0.0  ;;  %v1686_v41 = vmul.f32 1.1, %v1660_v4  ;;  %v2512_v5 = vld [vmem:[%s2703_s13 + $0x98] sm:$0xff] }
 0x276   : > { %1854 = vperm.xlu1 %2302, %v1731_v43   ;;  %1756 = vst.msk [vmem:[%s3709_s10 + $0x90] sm:$0xff] %vm1737_vm1, %v1731_v43  ;;  %v2187_v54 = vadd.f32 -0.1, %v1685_v17  ;;  %v2513_v43 = vld [vmem:[%s2703_s13 + $0x80] sm:$0xff] }
 0x277   : > { %1757 = vst.msk [vmem:[%s3709_s10 + $0x98] sm:$0xff] %vm1737_vm1, %v1732_v48  ;;  %v2188_v36 = vadd.f32 -0.1, %v1686_v41 }
 0x278   : > { %v2492_v7 = vpop.eup %2491  ;;  %v1733_v24 = vmax.f32 %v2187_v54, 0.0 }
 0x279   : > { %1859 = vperm.xlu0 %2301, %v1732_v48   ;;  %v1734_v60 = vmax.f32 %v2188_v36, 0.0  ;;  %v1662_v22 = vmul.f32 %v2492_v7, %v2474_v37  ;;  %v2502_v37 = vld [vmem:[%s2703_s13 + $0x38] sm:$0xff]  ;;  %v2514_v48 = vld [vmem:[%s2703_s13 + $0x88] sm:$0xff]  ;;  %v2515_v36 = vld [vmem:[%s2703_s13 + $0xa0] sm:$0xff] }
 0x27a   : > { %1864 = vperm.xlu1 %2302, %v1733_v24   ;;  %1758 = vst.msk [vmem:[%s3709_s10 + $0xa0] sm:$0xff] %vm1737_vm1, %v1733_v24  ;;  %v2516_v24 = vld [vmem:[%s2703_s13 + $0xa8] sm:$0xff] }
 0x27b   : > { %1759 = vst.msk [vmem:[%s3709_s10 + $0xa8] sm:$0xff] %vm1737_vm1, %v1734_v60  ;;  %v1687_v16 = vmul.f32 1.1, %v1662_v22 }
 0x27d   : > { %v2494_v27 = vpop.eup %2493  ;;  %1869 = vperm.xlu0 %2301, %v1734_v60   ;;  %v2189_v38 = vadd.f32 -0.1, %v1687_v16  ;;  %v2517_v16 = vld [vmem:[%s2703_s13 + $0xb0] sm:$0xff] }
 0x27e   : > { %v1664_v3 = vmul.f32 %v2494_v27, %v2484_v46 }
 0x27f   : > { %v1735_v23 = vmax.f32 %v2189_v38, 0.0  ;;  %v2518_v38 = vld [vmem:[%s2703_s13 + $0xb8] sm:$0xff] }
 0x280   : > { %v1688_v2 = vmul.f32 1.1, %v1664_v3 }
 0x281   : > { %1874 = vperm.xlu1 %2302, %v1735_v23   ;;  %1760 = vst.msk [vmem:[%s3709_s10 + $0xb0] sm:$0xff] %vm1737_vm1, %v1735_v23 }
 0x282   : > { %v2190_v31 = vadd.f32 -0.1, %v1688_v2  ;;  %v2519_v2 = vld [vmem:[%s2703_s13 + $0xc0] sm:$0xff] }
 0x284   : > { %v1736_v49 = vmax.f32 %v2190_v31, 0.0 }
 0x286   : > { %1879 = vperm.xlu0 %2301, %v1736_v49   ;;  %1761 = vst.msk [vmem:[%s3709_s10 + $0xb8] sm:$0xff] %vm1737_vm1, %v1736_v49  ;;  %v2520_v49 = vld [vmem:[%s2703_s13 + $0xc8] sm:$0xff]  ;;  %s2257_s10 = smul.u32 6144, %s2668_s25  ;;  %s4057_s25 = scalar_lea.sflag [#allocation3], %s273_s20 }
 0x288   : > { %s4047_s17 = scalar_lea.hbm %s4103_s5, %s2257_s10 }
 0x2a9   : > { %v1765_v28 = vpop.permute.xlu0 %1764 }
 0x2aa   : > { %v1882_v50 = vmul.f32 %v2495_v35, %v1765_v28  ;;  %v1883_v63 = vmul.f32 %v2496_v42, %v1765_v28 }
 0x2ac   : > { %v1770_v45 = vpop.permute.xlu1 %1769  ;;  %1930 = vst [vmem:[%s3950_s11] sm:$0xff] %v1882_v50  ;;  %1931 = vst [vmem:[%s3950_s11 + $0x8] sm:$0xff] %v1883_v63  ;;  %v2521_v50 = vld [vmem:[%s2703_s13 + $0xd0] sm:$0xff]  ;;  %v2522_v63 = vld [vmem:[%s2703_s13 + $0xd8] sm:$0xff] }
 0x2ad   : > { %v1884_v39 = vmul.f32 %v2497_v29, %v1770_v45  ;;  %v1885_v34 = vmul.f32 %v2498_v61, %v1770_v45 }
 0x2af   : > { %1932 = vst [vmem:[%s3950_s11 + $0x10] sm:$0xff] %v1884_v39  ;;  %1933 = vst [vmem:[%s3950_s11 + $0x18] sm:$0xff] %v1885_v34  ;;  %v2523_v39 = vld [vmem:[%s2703_s13 + $0xe0] sm:$0xff]  ;;  %v2524_v34 = vld [vmem:[%s2703_s13 + $0xe8] sm:$0xff] }
 0x2b1   : > { %v1775_v21 = vpop.permute.xlu1 %1774 }
 0x2b2   : > { %v1886_v52 = vmul.f32 %v2499_v51, %v1775_v21  ;;  %v1887_v44 = vmul.f32 %v2500_v15, %v1775_v21 }
 0x2b4   : > { %1934 = vst [vmem:[%s3950_s11 + $0x20] sm:$0xff] %v1886_v52  ;;  %1935 = vst [vmem:[%s3950_s11 + $0x28] sm:$0xff] %v1887_v44  ;;  %v2525_v52 = vld [vmem:[%s2703_s13 + $0xf0] sm:$0xff]  ;;  %v2526_v44 = vld [vmem:[%s2703_s13 + $0xf8] sm:$0xff] }
 0x2b5   : > { %v1780_v20 = vpop.permute.xlu1 %1779 }
 0x2b6   : > { %v1888_v26 = vmul.f32 %v2501_v18, %v1780_v20  ;;  %v1889_v12 = vmul.f32 %v2502_v37, %v1780_v20 }
 0x2b8   : > { %1936 = vst [vmem:[%s3950_s11 + $0x30] sm:$0xff] %v1888_v26  ;;  %1937 = vst [vmem:[%s3950_s11 + $0x38] sm:$0xff] %v1889_v12  ;;  %v2527_v26 = vld [vmem:[%s2703_s13 + $0x100] sm:$0xff]  ;;  %v2528_v12 = vld [vmem:[%s2703_s13 + $0x108] sm:$0xff] }
 0x2c3   : > { %v1785_v19 = vpop.permute.xlu1 %1784 }
 0x2c4   : > { %v1890_v47 = vmul.f32 %v2503_v25, %v1785_v19  ;;  %v1891_v6 = vmul.f32 %v2504_v53, %v1785_v19 }
 0x2c6   : > { %1938 = vst [vmem:[%s3950_s11 + $0x40] sm:$0xff] %v1890_v47  ;;  %1939 = vst [vmem:[%s3950_s11 + $0x48] sm:$0xff] %v1891_v6  ;;  %v2529_v47 = vld [vmem:[%s2703_s13 + $0x110] sm:$0xff]  ;;  %v2530_v6 = vld [vmem:[%s2703_s13 + $0x118] sm:$0xff] }
 0x2ca   : > { %v1790_v10 = vpop.permute.xlu1 %1789 }
 0x2cb   : > { %v1892_v40 = vmul.f32 %v2505_v56, %v1790_v10  ;;  %v1893_v11 = vmul.f32 %v2506_v9, %v1790_v10 }
 0x2cd   : > { %1940 = vst [vmem:[%s3950_s11 + $0x50] sm:$0xff] %v1892_v40  ;;  %1941 = vst [vmem:[%s3950_s11 + $0x58] sm:$0xff] %v1893_v11  ;;  %v2531_v40 = vld [vmem:[%s2703_s13 + $0x120] sm:$0xff]  ;;  %v2532_v11 = vld [vmem:[%s2703_s13 + $0x128] sm:$0xff] }
 0x2d0   : > { %v1795_v46 = vpop.permute.xlu1 %1794 }
 0x2d1   : > { %v1894_v33 = vmul.f32 %v2507_v0, %v1795_v46  ;;  %v1895_v1 = vmul.f32 %v2508_v55, %v1795_v46 }
 0x2d3   : > { %1942 = vst [vmem:[%s3950_s11 + $0x60] sm:$0xff] %v1894_v33  ;;  %1943 = vst [vmem:[%s3950_s11 + $0x68] sm:$0xff] %v1895_v1  ;;  %v2533_v33 = vld [vmem:[%s2703_s13 + $0x130] sm:$0xff]  ;;  %v2534_v1 = vld [vmem:[%s2703_s13 + $0x138] sm:$0xff] }
 0x2db   : > { %v1800_v58 = vpop.permute.xlu1 %1799 }
 0x2dc   : > { %v1896_v57 = vmul.f32 %v2509_v13, %v1800_v58  ;;  %v1897_v32 = vmul.f32 %v2510_v14, %v1800_v58 }
 0x2de   : > { %1944 = vst [vmem:[%s3950_s11 + $0x70] sm:$0xff] %v1896_v57  ;;  %1945 = vst [vmem:[%s3950_s11 + $0x78] sm:$0xff] %v1897_v32  ;;  %v1810_v30 = vpop.permute.xlu0 %1809  ;;  %v2535_v57 = vld [vmem:[%s2703_s13 + $0x140] sm:$0xff]  ;;  %v2536_v32 = vld [vmem:[%s2703_s13 + $0x148] sm:$0xff] }
 0x2df   : > { %v1805_v59 = vpop.permute.xlu1 %1804  ;;  %v1900_v8 = vmul.f32 %v2511_v62, %v1810_v30  ;;  %v1901_v4 = vmul.f32 %v2512_v5, %v1810_v30  ;;  %v2537_v62 = vld [vmem:[%s2703_s13 + $0x150] sm:$0xff]  ;;  %v2538_v5 = vld [vmem:[%s2703_s13 + $0x158] sm:$0xff] }
 0x2e0   : > { %v1898_v17 = vmul.f32 %v2513_v43, %v1805_v59  ;;  %v1899_v41 = vmul.f32 %v2514_v48, %v1805_v59 }
 0x2e1   : > { %1948 = vst [vmem:[%s3950_s11 + $0x90] sm:$0xff] %v1900_v8  ;;  %1949 = vst [vmem:[%s3950_s11 + $0x98] sm:$0xff] %v1901_v4 }
 0x2e2   : > { %1946 = vst [vmem:[%s3950_s11 + $0x80] sm:$0xff] %v1898_v17  ;;  %1947 = vst [vmem:[%s3950_s11 + $0x88] sm:$0xff] %v1899_v41  ;;  %v2539_v17 = vld [vmem:[%s2703_s13 + $0x160] sm:$0xff]  ;;  %v2540_v41 = vld [vmem:[%s2703_s13 + $0x168] sm:$0xff] }
 0x2e3   : > { %v1815_v54 = vpop.permute.xlu1 %1814 }
 0x2e4   : > { %v1902_v7 = vmul.f32 %v2515_v36, %v1815_v54  ;;  %v1903_v60 = vmul.f32 %v2516_v24, %v1815_v54  ;;  %v1820_v22 = vpop.permute.xlu0 %1819 }
 0x2e5   : > { %v1904_v27 = vmul.f32 %v2517_v16, %v1820_v22  ;;  %v1905_v3 = vmul.f32 %v2518_v38, %v1820_v22 }
 0x2e6   : > { %1950 = vst [vmem:[%s3950_s11 + $0xa0] sm:$0xff] %v1902_v7  ;;  %1951 = vst [vmem:[%s3950_s11 + $0xa8] sm:$0xff] %v1903_v60  ;;  %v2541_v7 = vld [vmem:[%s2703_s13 + $0x170] sm:$0xff]  ;;  %v2542_v60 = vld [vmem:[%s2703_s13 + $0x178] sm:$0xff]  ;;  %s2549_s13 = scalar_lea.vmem %s2548_s19, 12288 }
 0x2e7   : > { %1952 = vst [vmem:[%s3950_s11 + $0xb0] sm:$0xff] %v1904_v27  ;;  %1953 = vst [vmem:[%s3950_s11 + $0xb8] sm:$0xff] %v1905_v3  ;;  %v1825_v23 = vpop.permute.xlu1 %1824  ;;  %p2551_p1 = scmp.lt.s32.totalorder %s2549_s13, %s2543_s18 }
 0x2e8   : > { %v1906_v31 = vmul.f32 %v2519_v2, %v1825_v23  ;;  %v1907_v28 = vmul.f32 %v2520_v49, %v1825_v23  ;;  %v1830_v35 = vpop.permute.xlu0 %1829 }
 0x2e9   : > { %v1908_v42 = vmul.f32 %v2521_v50, %v1830_v35  ;;  %v1909_v45 = vmul.f32 %v2522_v63, %v1830_v35  ;;  %p2552_p2 = por %p2551_p1, %p2550_p0 }
 0x2ea   : > { %1954 = vst [vmem:[%s3950_s11 + $0xc0] sm:$0xff] %v1906_v31  ;;  %1955 = vst [vmem:[%s3950_s11 + $0xc8] sm:$0xff] %v1907_v28 }
 0x2eb   : > { %1956 = vst [vmem:[%s3950_s11 + $0xd0] sm:$0xff] %v1908_v42  ;;  %1957 = vst [vmem:[%s3950_s11 + $0xd8] sm:$0xff] %v1909_v45  ;;  %v1835_v29 = vpop.permute.xlu1 %1834  ;;  %p2553_p3 = pnand %p2552_p2, %p2546_p13 }
 0x2ec   : > { %v1910_v61 = vmul.f32 %v2523_v39, %v1835_v29  ;;  %v1911_v21 = vmul.f32 %v2524_v34, %v1835_v29  ;;  %v1840_v51 = vpop.permute.xlu0 %1839 }
 0x2ed   : > { %v1912_v15 = vmul.f32 %v2525_v52, %v1840_v51  ;;  %v1913_v20 = vmul.f32 %v2526_v44, %v1840_v51 }
 0x2ee   : > { %1958 = vst [vmem:[%s3950_s11 + $0xe0] sm:$0xff] %v1910_v61  ;;  %1959 = vst [vmem:[%s3950_s11 + $0xe8] sm:$0xff] %v1911_v21 }
 0x2ef   : > { %1960 = vst [vmem:[%s3950_s11 + $0xf0] sm:$0xff] %v1912_v15  ;;  %1961 = vst [vmem:[%s3950_s11 + $0xf8] sm:$0xff] %v1913_v20  ;;  %v1845_v18 = vpop.permute.xlu1 %1844 }
 0x2f0   : > { %v1914_v37 = vmul.f32 %v2527_v26, %v1845_v18  ;;  %v1915_v19 = vmul.f32 %v2528_v12, %v1845_v18 }
 0x2f2   : > { %1962 = vst [vmem:[%s3950_s11 + $0x100] sm:$0xff] %v1914_v37  ;;  %1963 = vst [vmem:[%s3950_s11 + $0x108] sm:$0xff] %v1915_v19 }
 0x2f4   : > { %v1850_v25 = vpop.permute.xlu0 %1849 }
 0x2f5   : > { %v1916_v53 = vmul.f32 %v2529_v47, %v1850_v25  ;;  %v1917_v10 = vmul.f32 %v2530_v6, %v1850_v25  ;;  %v1855_v56 = vpop.permute.xlu1 %1854 }
 0x2f6   : > { %v1918_v9 = vmul.f32 %v2531_v40, %v1855_v56  ;;  %v1919_v46 = vmul.f32 %v2532_v11, %v1855_v56 }
 0x2f7   : > { %1964 = vst [vmem:[%s3950_s11 + $0x110] sm:$0xff] %v1916_v53  ;;  %1965 = vst [vmem:[%s3950_s11 + $0x118] sm:$0xff] %v1917_v10 }
 0x2f8   : > { %1966 = vst [vmem:[%s3950_s11 + $0x120] sm:$0xff] %v1918_v9  ;;  %1967 = vst [vmem:[%s3950_s11 + $0x128] sm:$0xff] %v1919_v46  ;;  %v1860_v0 = vpop.permute.xlu0 %1859 }
 0x2f9   : > { %v1920_v55 = vmul.f32 %v2533_v33, %v1860_v0  ;;  %v1921_v58 = vmul.f32 %v2534_v1, %v1860_v0  ;;  %v1865_v13 = vpop.permute.xlu1 %1864 }
 0x2fa   : > { %v1922_v14 = vmul.f32 %v2535_v57, %v1865_v13  ;;  %v1923_v30 = vmul.f32 %v2536_v32, %v1865_v13 }
 0x2fb   : > { %1968 = vst [vmem:[%s3950_s11 + $0x130] sm:$0xff] %v1920_v55  ;;  %1969 = vst [vmem:[%s3950_s11 + $0x138] sm:$0xff] %v1921_v58 }
 0x2fc   : > { %1970 = vst [vmem:[%s3950_s11 + $0x140] sm:$0xff] %v1922_v14  ;;  %1971 = vst [vmem:[%s3950_s11 + $0x148] sm:$0xff] %v1923_v30  ;;  %v1870_v59 = vpop.permute.xlu0 %1869 }
 0x2fd   : > { %v1924_v8 = vmul.f32 %v2537_v62, %v1870_v59  ;;  %v1925_v4 = vmul.f32 %v2538_v5, %v1870_v59 }
 0x2ff   : > { %1972 = vst [vmem:[%s3950_s11 + $0x150] sm:$0xff] %v1924_v8  ;;  %1973 = vst [vmem:[%s3950_s11 + $0x158] sm:$0xff] %v1925_v4 }
 0x300   : > { %v1875_v43 = vpop.permute.xlu1 %1874 }
 0x301   : > { %v1926_v48 = vmul.f32 %v2539_v17, %v1875_v43  ;;  %v1927_v54 = vmul.f32 %v2540_v41, %v1875_v43 }
 0x303   : > { %1974 = vst [vmem:[%s3950_s11 + $0x160] sm:$0xff] %v1926_v48  ;;  %1975 = vst [vmem:[%s3950_s11 + $0x168] sm:$0xff] %v1927_v54 }
 0x305   : > { %v1880_v36 = vpop.permute.xlu0 %1879 }
 0x306   : > { %v1928_v24 = vmul.f32 %v2541_v7, %v1880_v36  ;;  %v1929_v22 = vmul.f32 %v2542_v60, %v1880_v36 }
 0x308   : > { %1976 = vst [vmem:[%s3950_s11 + $0x170] sm:$0xff] %v1928_v24  ;;  %1977 = vst [vmem:[%s3950_s11 + $0x178] sm:$0xff] %v1929_v22 }
 0x309   : > { %2556 = shalt.err (!%p2553_p3)
}
 0x30a   : > { %s2557_s26 = scalar_lea.hbm %s4047_s17, 6144  ;;  %s2561_s20 = scalar_lea.hbm %s4103_s5, 12288 }
 0x30b   : > { %p2558_p4 = scmp.ne.s32.totalorder %s4047_s17, %s2557_s26  ;;  %p2562_p9 = scmp.lt.u32.totalorder %s4047_s17, %s4103_s5 }
 0x30c   : > { %p2563_p10 = scmp.lt.u32.totalorder %s2561_s20, %s2557_s26  ;;  %p2565_p12 = scmp.lt.u32.totalorder %s2557_s26, %s4047_s17 }
 0x30d   : > { %p2559_p7 = pnand %p2558_p4, %p2685_p5 }
 0x30e   : > { %p2564_p11 = por %p2563_p10, %p2562_p9 }
 0x30f   : > { %p2560_p8 = pneg %p2559_p7 }
 0x310   : > { %p2566_p13 = por %p2565_p12, %p2564_p11 }
 0x312   : > { %p2567_p0 = pnand %p2566_p13, %p2560_p8 }
 0x314   : > { %2570 = shalt.err (!%p2567_p0)
}
 0x315   : > { %s2610_s10 = smov 256   ;;  %s2611_s15 = smov 16  }
 0x316   : > { %2258 = dma.vmem_to_hbm [thread:$0]  (%p2685_p5), %s4051_s12, 6144, %s4047_s17, %s4057_s25, %s2610_s10, %s2610_s10, %s2611_s15  }
 0x317 PF: > { %p2264_p1 = scmp.ge.s32.totalorder %s2605_s24, 2  ;;  %s2015_s16 = sand.u32 1, %s2593_s21  }
 0x318   : > { %s2016_s18 = scalar_lea.sflag [#allocation3], %s2015_s16 }
 0x319   : > { %p2261_p2 = pnand %p2264_p1, %p2689_p6 }
 0x31b   : > { %2588 = dma.done.wait (!%p2261_p2), %s2016_s18, 6144  }
 0x31c   : > { %2590 = vsyncadd (!%p2261_p2), %s2016_s18, 4294961152  ;;  %p17_p3 = scmp.ge.s32.totalorder %s2672_s27, 4   ;;  %s4129_s21 = smov %s2597_s22 }
 0x31d   : > { %s4130_s22 = smov %s2601_s23  ;;  %s4131_s23 = smov %s2683_s30 }
 0x31e   : > { %s4132_s24 = smov %s2672_s27  ;;  %19 = sbr.rel (!%p17_p3) target bundleno = 3 (0x3), region = 93 }
 0x325   :  { %2029 = vsyncpa [#allocation3], 1 }
 0x326   :  { %2031 = vsyncpa [#allocation3 + $0x1], 1 }

</bundles_post_ra>
